<compile_context>
chip_gen: v7x
topology: tpu7x:2x2x1
jax: 0.10.0
libtpu: 0.0.40
codegen_flags: <defaults>
</compile_context>

<pallas_src>
import functools

import jax
import jax.numpy as jnp
from jax import lax
from jax.experimental import pallas as pl
from jax.experimental.pallas import tpu as pltpu

EXPANSION = 4
BN_EPS = 1e-5
LANE = 128


def _round_up(x, m):
    return (x + m - 1) // m * m


def _pad_to(a, shape):
    return jnp.pad(a, [(0, t - s) for s, t in zip(a.shape, shape)])


def _bottleneck_kernel(H, W, Cin, P, Cout,
                       x_ref, w1_ref, b1_ref,
                       w2_ref, b2_ref,
                       w3_ref, wsc_ref, b3sc_ref,
                       out_ref):
    """One batch image per grid step (channel dims already lane-padded).

    x_ref   : (1, H, W, Cin)   bf16 input image (NHWC)
    w1_ref  : (Cin, P)         conv1 1x1, BN1 scale folded in
    w2_ref  : (3, 3P, P)       conv2 3x3, kx taps stacked along K, BN2 scale folded in
    w3_ref  : (P, Cout)        conv3 1x1, BN3 scale folded in
    wsc_ref : (Cin, Cout)      shortcut 1x1 projection, BN_sc scale folded in
    b1/b2   : (1, C) f32       folded BatchNorm biases
    b3sc_ref: (1, Cout) f32    bn3 bias + shortcut bn bias (pre-summed)
    out_ref : (1, H, W, Cout)  bf16
    """
    f32 = jnp.float32
    cdt = x_ref.dtype
    HW = H * W

    x2d = x_ref[0].reshape(HW, Cin)                                   # (HW, Cin)

    # ---- conv1 (1x1, scale folded) + bias + relu : one full-image matmul ----
    h1 = jnp.dot(x2d, w1_ref[...], preferred_element_type=f32)
    h1 = jnp.maximum(h1 + b1_ref[...], 0.0)
    h1 = h1.astype(cdt).reshape(H, W, P)

    # ---- conv2 (3x3, stride 1, pad 1, scale folded) + bias + relu ----
    # Horizontal taps: build [x-1 | x | x+1] shifted copies once, concat
    # along channels -> K = 3P per vertical tap.
    zcol = jnp.zeros((H, 1, P), cdt)
    left = jnp.concatenate([zcol, h1[:, :W - 1, :]], axis=1)          # h1[., x-1]
    right = jnp.concatenate([h1[:, 1:, :], zcol], axis=1)             # h1[., x+1]
    hcat = jnp.concatenate([left, h1, right], axis=-1)                # (H, W, 3P)

    # Vertical taps: shift along the (untiled) leading row axis.
    zrow = jnp.zeros((1, W, 3 * P), cdt)
    h_up = jnp.concatenate([zrow, hcat[:H - 1]], axis=0)              # row y-1
    h_dn = jnp.concatenate([hcat[1:], zrow], axis=0)                  # row y+1

    acc = jnp.dot(h_up.reshape(HW, 3 * P), w2_ref[0],
                  preferred_element_type=f32)
    acc += jnp.dot(hcat.reshape(HW, 3 * P), w2_ref[1],
                   preferred_element_type=f32)
    acc += jnp.dot(h_dn.reshape(HW, 3 * P), w2_ref[2],
                   preferred_element_type=f32)
    h2 = jnp.maximum(acc + b2_ref[...], 0.0).astype(cdt)

    # ---- conv3 (1x1) + shortcut projection (both scales folded) ----
    # Both accumulate into one f32 buffer -> residual add is free.
    y = jnp.dot(h2, w3_ref[...], preferred_element_type=f32)
    y += jnp.dot(x2d, wsc_ref[...], preferred_element_type=f32)

    out = jnp.maximum(y + b3sc_ref[...], 0.0).astype(out_ref.dtype)
    out_ref[0] = out.reshape(H, W, Cout)


def prepare_params(p, *, compute_dtype=jnp.bfloat16, lane=LANE):
    """One-time prep: fold BN scales into weights, pad channels, cast to bf16."""
    Cin, P = p['w1'].shape
    Cout = p['w3'].shape[1]
    Cin_p, P_p, Cout_p = (_round_up(c, lane) for c in (Cin, P, Cout))

    # Fold per-output-channel BN scale into the conv weights (f32, then cast).
    w1 = p['w1'] * p['s1']                                   # (Cin, P) * (1, P)
    w2 = p['w2'] * p['s2'].reshape(1, 1, 1, P)               # (3,3,P,P) * (...,P)
    w3 = p['w3'] * p['s3']                                   # (P, Cout) * (1, Cout)
    wsc = p['wsc'] * p['ssc']                                # (Cin, Cout) * (1, Cout)

    w1 = _pad_to(w1, (Cin_p, P_p)).astype(compute_dtype)
    w2 = _pad_to(w2, (3, 3, P_p, P_p)).astype(compute_dtype)
    w2cat = w2.reshape(3, 3 * P_p, P_p)                      # [ky, kx*P + cin, cout]
    w3 = _pad_to(w3, (P_p, Cout_p)).astype(compute_dtype)
    wsc = _pad_to(wsc, (Cin_p, Cout_p)).astype(compute_dtype)

    def bias(b, c):
        return _pad_to(b, (1, c)).astype(jnp.float32)

    b1 = bias(p['b1'], P_p)
    b2 = bias(p['b2'], P_p)
    b3sc = bias(p['b3'] + p['bsc'], Cout_p)                  # pre-summed bias

    return dict(w1=w1, b1=b1, w2cat=w2cat, b2=b2,
                w3=w3, wsc=wsc, b3sc=b3sc,
                dims=(Cin, P, Cout, Cin_p, P_p, Cout_p),
                compute_dtype=compute_dtype)


def bottleneck_forward_nhwc(x_nhwc, prep):
    """Fused Bottleneck on a channel-padded NHWC activation (bf16 in/out)."""
    Cin, P, Cout, Cin_p, P_p, Cout_p = prep['dims']
    cdt = prep['compute_dtype']
    N, H, W, C = x_nhwc.shape
    assert C == Cin_p and W % 8 == 0, (C, Cin_p, W)

    kernel = functools.partial(_bottleneck_kernel, H, W, Cin_p, P_p, Cout_p)

    mac_per_px = (Cin_p * P_p + 9 * P_p * P_p + P_p * Cout_p + Cin_p * Cout_p)
    flops = 2 * N * H * W * mac_per_px
    weight_bytes = 2 * mac_per_px                       # bf16 weights
    bytes_accessed = N * H * W * (Cin_p + Cout_p) * 2 + weight_bytes

    out = pl.pallas_call(
        kernel,
        out_shape=jax.ShapeDtypeStruct((N, H, W, Cout_p), cdt),
        grid_spec=pltpu.PrefetchScalarGridSpec(
            num_scalar_prefetch=0,
            grid=(N,),
            in_specs=[
                pl.BlockSpec((1, H, W, Cin_p), lambda n: (n, 0, 0, 0)),
                pl.BlockSpec((Cin_p, P_p), lambda n: (0, 0)),
                pl.BlockSpec((1, P_p), lambda n: (0, 0)),
                pl.BlockSpec((3, 3 * P_p, P_p), lambda n: (0, 0, 0)),
                pl.BlockSpec((1, P_p), lambda n: (0, 0)),
                pl.BlockSpec((P_p, Cout_p), lambda n: (0, 0)),
                pl.BlockSpec((Cin_p, Cout_p), lambda n: (0, 0)),
                pl.BlockSpec((1, Cout_p), lambda n: (0, 0)),
            ],
            out_specs=pl.BlockSpec((1, H, W, Cout_p), lambda n: (n, 0, 0, 0)),
        ),
        compiler_params=pltpu.CompilerParams(
            dimension_semantics=("parallel",),
            # Above the 16/32 MiB default scoped limits, below v7x's 64 MiB
            # physical VMEM.
            vmem_limit_bytes=48 * 1024 * 1024),
        cost_estimate=pl.CostEstimate(
            flops=flops, transcendentals=0, bytes_accessed=bytes_accessed),
    )(x_nhwc, prep['w1'], prep['b1'],
      prep['w2cat'], prep['b2'],
      prep['w3'], prep['wsc'], prep['b3sc'])
    return out


def bottleneck_forward(x_nchw, prep):
    """NCHW boundary wrapper (PyTorch convention). Returns NCHW bf16."""
    Cin, P, Cout, Cin_p, P_p, Cout_p = prep['dims']
    cdt = prep['compute_dtype']
    N, C, H, W = x_nchw.shape
    assert C == Cin, (C, Cin)

    x = jnp.transpose(x_nchw, (0, 2, 3, 1)).astype(cdt)               # NHWC bf16
    if Cin_p != Cin:
        x = jnp.pad(x, ((0, 0), (0, 0), (0, 0), (0, Cin_p - Cin)))

    out = bottleneck_forward_nhwc(x, prep)[..., :Cout]
    return jnp.transpose(out, (0, 3, 1, 2))                           # NCHW


def init_params(key, in_planes, planes):
    """Deterministic synthetic parameters (matches Bottleneck.__init__ shapes)."""
    Cout = EXPANSION * planes
    ks = jax.random.split(key, 20)

    def bn_fold(kg, kb, km, kv, c):
        gamma = 1.0 + 0.1 * jax.random.normal(kg, (c,), jnp.float32)
        beta = 0.1 * jax.random.normal(kb, (c,), jnp.float32)
        mean = 0.1 * jax.random.normal(km, (c,), jnp.float32)
        var = jax.random.uniform(kv, (c,), jnp.float32, 0.5, 1.5)
        scale = gamma / jnp.sqrt(var + BN_EPS)
        bias = beta - mean * scale
        return scale.reshape(1, c), bias.reshape(1, c)

    w1 = 0.2 * jax.random.normal(ks[0], (in_planes, planes), jnp.float32)
    s1, b1 = bn_fold(ks[1], ks[2], ks[3], ks[4], planes)
    w2 = 0.2 * jax.random.normal(ks[5], (3, 3, planes, planes), jnp.float32)
    s2, b2 = bn_fold(ks[6], ks[7], ks[8], ks[9], planes)
    w3 = 0.2 * jax.random.normal(ks[10], (planes, Cout), jnp.float32)
    s3, b3 = bn_fold(ks[11], ks[12], ks[13], ks[14], Cout)
    wsc = 0.2 * jax.random.normal(ks[15], (in_planes, Cout), jnp.float32)
    ssc, bsc = bn_fold(ks[16], ks[17], ks[18], ks[19], Cout)

    return dict(w1=w1, s1=s1, b1=b1, w2=w2, s2=s2, b2=b2,
                w3=w3, s3=s3, b3=b3, wsc=wsc, ssc=ssc, bsc=bsc)


def bottleneck_reference(x_nchw, p, compute_dtype=jnp.bfloat16):
    """Pure-JAX reference with the same eval-BN + bf16-input/f32-accum numerics."""
    cdt = compute_dtype
    x = jnp.transpose(x_nchw, (0, 2, 3, 1)).astype(cdt)               # NHWC

    def pw(h, w):                                                     # 1x1 conv
        return jnp.einsum('nhwc,cp->nhwp', h, w.astype(cdt),
                          preferred_element_type=jnp.float32)

    h = jnp.maximum(pw(x, p['w1']) * p['s1'] + p['b1'], 0.0).astype(cdt)
    h = lax.conv_general_dilated(h, p['w2'].astype(cdt),
                                 window_strides=(1, 1), padding='SAME',
                                 dimension_numbers=('NHWC', 'HWIO', 'NHWC'),
                                 preferred_element_type=jnp.float32)
    h = jnp.maximum(h * p['s2'] + p['b2'], 0.0).astype(cdt)
    h = pw(h, p['w3']) * p['s3'] + p['b3']
    sc = pw(x, p['wsc']) * p['ssc'] + p['bsc']
    out = jnp.maximum(h + sc, 0.0)
    return jnp.transpose(out, (0, 3, 1, 2))                           # NCHW


if __name__ == "__main__":
    key = jax.random.PRNGKey(0)
    k_x, k_p = jax.random.split(key)

    N, Cin, H, W = 2, 4, 16, 16        # in_planes=4
    planes = 4                         # -> out channels = 4 * planes = 16

    x = jax.random.normal(k_x, (N, Cin, H, W), jnp.float32)
    params = init_params(k_p, Cin, planes)
    prep = prepare_params(params)

    out = bottleneck_forward(x, prep)
    out = jax.block_until_ready(out)

    ref = bottleneck_reference(x, params)
    assert out.shape == (N, EXPANSION * planes, H, W), out.shape
    out_f32 = out.astype(jnp.float32)
    if not jnp.allclose(out_f32, ref, atol=2e-2, rtol=2e-2):
        max_err = float(jnp.max(jnp.abs(out_f32 - ref)))
        raise AssertionError(f"Pallas output mismatch, max abs err {max_err}")

    print("KERNEL_OK")
</pallas_src>

<mosaic_0001>
module attributes {stable_mosaic.version = 11 : i64} {
  func.func @_bottleneck_kernel(%arg0: i32, %arg1: memref<1x16x16x128xbf16, #tpu.memory_space<vmem>>, %arg2: memref<128x128xbf16, #tpu.memory_space<vmem>>, %arg3: memref<1x128xf32, #tpu.memory_space<vmem>>, %arg4: memref<3x384x128xbf16, #tpu.memory_space<vmem>>, %arg5: memref<1x128xf32, #tpu.memory_space<vmem>>, %arg6: memref<128x128xbf16, #tpu.memory_space<vmem>>, %arg7: memref<128x128xbf16, #tpu.memory_space<vmem>>, %arg8: memref<1x128xf32, #tpu.memory_space<vmem>>, %arg9: memref<1x16x16x128xbf16, #tpu.memory_space<vmem>>) attributes {dimension_semantics = [#tpu.dimension_semantics<parallel>], iteration_bounds = array<i64: 2>, scalar_prefetch = 0 : i64, scratch_operands = 0 : i64, tpu.core_type = #tpu.core_type<tc>, window_params = [{transform_indices = @transform_0, window_bounds = array<i64: 1, 16, 16, 128>}, {pipeline_mode = #tpu.pipeline_mode<synchronous>, transform_indices = @transform_1, window_bounds = array<i64: 128, 128>}, {pipeline_mode = #tpu.pipeline_mode<synchronous>, transform_indices = @transform_2, window_bounds = array<i64: 1, 128>}, {pipeline_mode = #tpu.pipeline_mode<synchronous>, transform_indices = @transform_3, window_bounds = array<i64: 3, 384, 128>}, {pipeline_mode = #tpu.pipeline_mode<synchronous>, transform_indices = @transform_4, window_bounds = array<i64: 1, 128>}, {pipeline_mode = #tpu.pipeline_mode<synchronous>, transform_indices = @transform_5, window_bounds = array<i64: 128, 128>}, {pipeline_mode = #tpu.pipeline_mode<synchronous>, transform_indices = @transform_6, window_bounds = array<i64: 128, 128>}, {pipeline_mode = #tpu.pipeline_mode<synchronous>, transform_indices = @transform_7, window_bounds = array<i64: 1, 128>}, {transform_indices = @transform_8, window_bounds = array<i64: 1, 16, 16, 128>}]} {
    %c0 = arith.constant 0 : index
    %c0_0 = arith.constant 0 : index
    %c0_1 = arith.constant 0 : index
    %c0_2 = arith.constant 0 : index
    %0 = vector.load %arg1[%c0, %c0_0, %c0_1, %c0_2] : memref<1x16x16x128xbf16, #tpu.memory_space<vmem>>, vector<1x16x16x128xbf16>
    %1 = vector.shape_cast %0 : vector<1x16x16x128xbf16> to vector<16x16x128xbf16>
    %2 = vector.shape_cast %1 : vector<16x16x128xbf16> to vector<256x128xbf16>
    %c0_3 = arith.constant 0 : index
    %c0_4 = arith.constant 0 : index
    %3 = vector.load %arg2[%c0_3, %c0_4] : memref<128x128xbf16, #tpu.memory_space<vmem>>, vector<128x128xbf16>
    %cst = arith.constant dense<0.000000e+00> : vector<256x128xf32>
    %4 = tpu.matmul %2, %3, %cst {dimension_numbers = #tpu.dot_dimension_numbers<[1], [0], [0], [1], [0, 0, 1, 1], [], []>} : vector<256x128xbf16>, vector<128x128xbf16>, vector<256x128xf32> -> vector<256x128xf32>
    %c0_5 = arith.constant 0 : index
    %c0_6 = arith.constant 0 : index
    %5 = vector.load %arg3[%c0_5, %c0_6] : memref<1x128xf32, #tpu.memory_space<vmem>>, vector<1x128xf32>
    %6 = vector.broadcast %5 : vector<1x128xf32> to vector<256x128xf32>
    %7 = arith.addf %4, %6 : vector<256x128xf32>
    %cst_7 = arith.constant 0.000000e+00 : f32
    %8 = vector.broadcast %cst_7 : f32 to vector<256x128xf32>
    %9 = arith.maximumf %7, %8 : vector<256x128xf32>
    %10 = arith.truncf %9 : vector<256x128xf32> to vector<256x128xbf16>
    %11 = vector.shape_cast %10 : vector<256x128xbf16> to vector<16x16x128xbf16>
    %cst_8 = arith.constant 0.000000e+00 : bf16
    %12 = vector.broadcast %cst_8 : bf16 to vector<16x1x128xbf16>
    %13 = vector.extract_strided_slice %11 {offsets = [0, 0, 0], sizes = [16, 15, 128], strides = [1, 1, 1]} : vector<16x16x128xbf16> to vector<16x15x128xbf16>
    %14 = tpu.concatenate %12, %13 in 1 : vector<16x1x128xbf16>, vector<16x15x128xbf16> -> vector<16x16x128xbf16>
    %15 = vector.extract_strided_slice %11 {offsets = [0, 1, 0], sizes = [16, 15, 128], strides = [1, 1, 1]} : vector<16x16x128xbf16> to vector<16x15x128xbf16>
    %16 = tpu.concatenate %15, %12 in 1 : vector<16x15x128xbf16>, vector<16x1x128xbf16> -> vector<16x16x128xbf16>
    %17 = tpu.concatenate %14, %11, %16 in 2 : vector<16x16x128xbf16>, vector<16x16x128xbf16>, vector<16x16x128xbf16> -> vector<16x16x384xbf16>
    %cst_9 = arith.constant 0.000000e+00 : bf16
    %18 = vector.broadcast %cst_9 : bf16 to vector<1x16x384xbf16>
    %19 = vector.extract_strided_slice %17 {offsets = [0, 0, 0], sizes = [15, 16, 384], strides = [1, 1, 1]} : vector<16x16x384xbf16> to vector<15x16x384xbf16>
    %20 = tpu.concatenate %18, %19 in 0 : vector<1x16x384xbf16>, vector<15x16x384xbf16> -> vector<16x16x384xbf16>
    %21 = vector.extract_strided_slice %17 {offsets = [1, 0, 0], sizes = [15, 16, 384], strides = [1, 1, 1]} : vector<16x16x384xbf16> to vector<15x16x384xbf16>
    %22 = tpu.concatenate %21, %18 in 0 : vector<15x16x384xbf16>, vector<1x16x384xbf16> -> vector<16x16x384xbf16>
    %23 = vector.shape_cast %20 : vector<16x16x384xbf16> to vector<256x384xbf16>
    %c0_10 = arith.constant 0 : index
    %c0_11 = arith.constant 0 : index
    %c0_12 = arith.constant 0 : index
    %24 = vector.load %arg4[%c0_10, %c0_11, %c0_12] : memref<3x384x128xbf16, #tpu.memory_space<vmem>>, vector<1x384x128xbf16>
    %25 = vector.shape_cast %24 : vector<1x384x128xbf16> to vector<384x128xbf16>
    %cst_13 = arith.constant dense<0.000000e+00> : vector<256x128xf32>
    %26 = tpu.matmul %23, %25, %cst_13 {dimension_numbers = #tpu.dot_dimension_numbers<[1], [0], [0], [1], [0, 0, 1, 1], [], []>} : vector<256x384xbf16>, vector<384x128xbf16>, vector<256x128xf32> -> vector<256x128xf32>
    %27 = vector.shape_cast %17 : vector<16x16x384xbf16> to vector<256x384xbf16>
    %c1 = arith.constant 1 : index
    %c0_14 = arith.constant 0 : index
    %c0_15 = arith.constant 0 : index
    %28 = vector.load %arg4[%c1, %c0_14, %c0_15] : memref<3x384x128xbf16, #tpu.memory_space<vmem>>, vector<1x384x128xbf16>
    %29 = vector.shape_cast %28 : vector<1x384x128xbf16> to vector<384x128xbf16>
    %cst_16 = arith.constant dense<0.000000e+00> : vector<256x128xf32>
    %30 = tpu.matmul %27, %29, %cst_16 {dimension_numbers = #tpu.dot_dimension_numbers<[1], [0], [0], [1], [0, 0, 1, 1], [], []>} : vector<256x384xbf16>, vector<384x128xbf16>, vector<256x128xf32> -> vector<256x128xf32>
    %31 = arith.addf %26, %30 : vector<256x128xf32>
    %32 = vector.shape_cast %22 : vector<16x16x384xbf16> to vector<256x384xbf16>
    %c2 = arith.constant 2 : index
    %c0_17 = arith.constant 0 : index
    %c0_18 = arith.constant 0 : index
    %33 = vector.load %arg4[%c2, %c0_17, %c0_18] : memref<3x384x128xbf16, #tpu.memory_space<vmem>>, vector<1x384x128xbf16>
    %34 = vector.shape_cast %33 : vector<1x384x128xbf16> to vector<384x128xbf16>
    %cst_19 = arith.constant dense<0.000000e+00> : vector<256x128xf32>
    %35 = tpu.matmul %32, %34, %cst_19 {dimension_numbers = #tpu.dot_dimension_numbers<[1], [0], [0], [1], [0, 0, 1, 1], [], []>} : vector<256x384xbf16>, vector<384x128xbf16>, vector<256x128xf32> -> vector<256x128xf32>
    %36 = arith.addf %31, %35 : vector<256x128xf32>
    %c0_20 = arith.constant 0 : index
    %c0_21 = arith.constant 0 : index
    %37 = vector.load %arg5[%c0_20, %c0_21] : memref<1x128xf32, #tpu.memory_space<vmem>>, vector<1x128xf32>
    %38 = vector.broadcast %37 : vector<1x128xf32> to vector<256x128xf32>
    %39 = arith.addf %36, %38 : vector<256x128xf32>
    %cst_22 = arith.constant 0.000000e+00 : f32
    %40 = vector.broadcast %cst_22 : f32 to vector<256x128xf32>
    %41 = arith.maximumf %39, %40 : vector<256x128xf32>
    %42 = arith.truncf %41 : vector<256x128xf32> to vector<256x128xbf16>
    %c0_23 = arith.constant 0 : index
    %c0_24 = arith.constant 0 : index
    %43 = vector.load %arg6[%c0_23, %c0_24] : memref<128x128xbf16, #tpu.memory_space<vmem>>, vector<128x128xbf16>
    %cst_25 = arith.constant dense<0.000000e+00> : vector<256x128xf32>
    %44 = tpu.matmul %42, %43, %cst_25 {dimension_numbers = #tpu.dot_dimension_numbers<[1], [0], [0], [1], [0, 0, 1, 1], [], []>} : vector<256x128xbf16>, vector<128x128xbf16>, vector<256x128xf32> -> vector<256x128xf32>
    %c0_26 = arith.constant 0 : index
    %c0_27 = arith.constant 0 : index
    %45 = vector.load %arg7[%c0_26, %c0_27] : memref<128x128xbf16, #tpu.memory_space<vmem>>, vector<128x128xbf16>
    %cst_28 = arith.constant dense<0.000000e+00> : vector<256x128xf32>
    %46 = tpu.matmul %2, %45, %cst_28 {dimension_numbers = #tpu.dot_dimension_numbers<[1], [0], [0], [1], [0, 0, 1, 1], [], []>} : vector<256x128xbf16>, vector<128x128xbf16>, vector<256x128xf32> -> vector<256x128xf32>
    %47 = arith.addf %44, %46 : vector<256x128xf32>
    %c0_29 = arith.constant 0 : index
    %c0_30 = arith.constant 0 : index
    %48 = vector.load %arg8[%c0_29, %c0_30] : memref<1x128xf32, #tpu.memory_space<vmem>>, vector<1x128xf32>
    %49 = vector.broadcast %48 : vector<1x128xf32> to vector<256x128xf32>
    %50 = arith.addf %47, %49 : vector<256x128xf32>
    %cst_31 = arith.constant 0.000000e+00 : f32
    %51 = vector.broadcast %cst_31 : f32 to vector<256x128xf32>
    %52 = arith.maximumf %50, %51 : vector<256x128xf32>
    %53 = arith.truncf %52 : vector<256x128xf32> to vector<256x128xbf16>
    %54 = vector.shape_cast %53 : vector<256x128xbf16> to vector<16x16x128xbf16>
    %c0_32 = arith.constant 0 : index
    %c0_33 = arith.constant 0 : index
    %c0_34 = arith.constant 0 : index
    %c0_35 = arith.constant 0 : index
    %55 = vector.load %arg9[%c0_32, %c0_33, %c0_34, %c0_35] : memref<1x16x16x128xbf16, #tpu.memory_space<vmem>>, vector<1x16x16x128xbf16>
    %56 = vector.shape_cast %55 : vector<1x16x16x128xbf16> to vector<16x16x128xbf16>
    %57 = vector.shape_cast %54 : vector<16x16x128xbf16> to vector<1x16x16x128xbf16>
    tpu.vector_store %arg9[%c0_32, %c0_33, %c0_34, %c0_35], %57 {strides = array<i32>} : memref<1x16x16x128xbf16, #tpu.memory_space<vmem>>, vector<1x16x16x128xbf16>,
    return
  }
  func.func @transform_0(%arg0: i32) -> (i32, i32, i32, i32) {
    %c0_i32 = arith.constant 0 : i32
    %c0_i32_0 = arith.constant 0 : i32
    %c0_i32_1 = arith.constant 0 : i32
    %c0_i32_2 = arith.constant 0 : i32
    return %arg0, %c0_i32, %c0_i32_0, %c0_i32_1 : i32, i32, i32, i32
  }
  func.func @transform_1(%arg0: i32) -> (i32, i32) {
    %c0_i32 = arith.constant 0 : i32
    %c0_i32_0 = arith.constant 0 : i32
    %c0_i32_1 = arith.constant 0 : i32
    return %c0_i32, %c0_i32_0 : i32, i32
  }
  func.func @transform_2(%arg0: i32) -> (i32, i32) {
    %c0_i32 = arith.constant 0 : i32
    %c0_i32_0 = arith.constant 0 : i32
    %c0_i32_1 = arith.constant 0 : i32
    return %c0_i32, %c0_i32_0 : i32, i32
  }
  func.func @transform_3(%arg0: i32) -> (i32, i32, i32) {
    %c0_i32 = arith.constant 0 : i32
    %c0_i32_0 = arith.constant 0 : i32
    %c0_i32_1 = arith.constant 0 : i32
    %c0_i32_2 = arith.constant 0 : i32
    return %c0_i32, %c0_i32_0, %c0_i32_1 : i32, i32, i32
  }
  func.func @transform_4(%arg0: i32) -> (i32, i32) {
    %c0_i32 = arith.constant 0 : i32
    %c0_i32_0 = arith.constant 0 : i32
    %c0_i32_1 = arith.constant 0 : i32
    return %c0_i32, %c0_i32_0 : i32, i32
  }
  func.func @transform_5(%arg0: i32) -> (i32, i32) {
    %c0_i32 = arith.constant 0 : i32
    %c0_i32_0 = arith.constant 0 : i32
    %c0_i32_1 = arith.constant 0 : i32
    return %c0_i32, %c0_i32_0 : i32, i32
  }
  func.func @transform_6(%arg0: i32) -> (i32, i32) {
    %c0_i32 = arith.constant 0 : i32
    %c0_i32_0 = arith.constant 0 : i32
    %c0_i32_1 = arith.constant 0 : i32
    return %c0_i32, %c0_i32_0 : i32, i32
  }
  func.func @transform_7(%arg0: i32) -> (i32, i32) {
    %c0_i32 = arith.constant 0 : i32
    %c0_i32_0 = arith.constant 0 : i32
    %c0_i32_1 = arith.constant 0 : i32
    return %c0_i32, %c0_i32_0 : i32, i32
  }
  func.func @transform_8(%arg0: i32) -> (i32, i32, i32, i32) {
    %c0_i32 = arith.constant 0 : i32
    %c0_i32_0 = arith.constant 0 : i32
    %c0_i32_1 = arith.constant 0 : i32
    %c0_i32_2 = arith.constant 0 : i32
    return %arg0, %c0_i32, %c0_i32_0, %c0_i32_1 : i32, i32, i32, i32
  }
}

</mosaic_0001>

<bundles_post_ra>
// kernel: tpu_custom_call.1
= control target key start
LH: loop header
LB: loop body
LE: loop exit
PB: predicated region body
PF: predicated region fallthrough
CT: control target
= control target key end

     0   :  { %13 = vsyncpa [#allocation3], 0  ;;  %s6425_s0 = inlined_call_operand.hbm [shape: bf16[2,16,16,128], index: 0, kind: input, shape index: {}]   ;;  %s6426_s1 = inlined_call_operand.hbm [shape: bf16[128,128], index: 1, kind: input, shape index: {}]   ;;  %s6427_s2 = inlined_call_operand.vmem [shape: f32[1,128], index: 2, kind: input, shape index: {}]   ;;  %s6428_s3 = inlined_call_operand.hbm [shape: bf16[3,384,128], index: 3, kind: input, shape index: {}]   ;;  %s6429_s4 = inlined_call_operand.vmem [shape: f32[1,128], index: 4, kind: input, shape index: {}]   ;;  %s6430_s5 = inlined_call_operand.hbm [shape: bf16[128,128], index: 5, kind: input, shape index: {}]   ;;  %s6431_s6 = inlined_call_operand.hbm [shape: bf16[128,128], index: 6, kind: input, shape index: {}]   ;;  %s6432_s7 = inlined_call_operand.vmem [shape: f32[1,128], index: 7, kind: input, shape index: {}]   ;;  %s6433_s8 = inlined_call_operand.hbm [shape: bf16[2,16,16,128], index: 8, kind: output, shape index: {}]  }
   0x1   :  { %15 = vsyncpa [#allocation3 + $0x1], 0 }
   0x2   :  { %16 = vsyncpa [#allocation6], 0 }
   0x3   :  { %17 = vsyncpa [#allocation9], 0 }
   0x4   :  { %18 = vsyncpa [#allocation4], 0 }
   0x5   :  { %20 = vsyncpa [#allocation4 + $0x1], 0  ;;  %s5226_s27 = smov 0   ;;  %s5228_s28 = smov 0  }
   0x6   :  { %s5230_s29 = smov 0   ;;  %s5232_s30 = smov 0  }
   0x7 LB: > { %6442 = sst [smem:[#allocation16_spill]] %s5156_s27  ;;  %s5247_s9 = sadd.s32 4294967295, %s5168_s30   ;;  %s5168_s30 = sphi %s5232_s30, %s6472_s30   ;;  %s5164_s29 = sphi %s5230_s29, %s6471_s29   ;;  %s5160_s28 = sphi %s5228_s28, %s6470_s28   ;;  %s5156_s27 = sphi %s5226_s27, %s6469_s27  }
   0x8   : > { %s3474_s10 = sadd.s32 4294967294, %s5168_s30   ;;  %p46_p0 = scmp.ne.s32.totalorder %s5160_s28, %s5156_s27 }
   0x9   : > { %p6434_p1 = scmp.eq.s32.totalorder %s5247_s9, 0  ;;  %p223_p3 = scmp.eq.s32.totalorder %s3474_s10, 1 }
   0xa   : > { %p3475_p5 = scmp.ge.s32.totalorder %s5168_s30, 1  ;;  %p230_p7 = scmp.lt.s32.totalorder %s5168_s30, 3 }
   0xb   : > { %p5256_p4 = por %p6434_p1, %p46_p0  ;;  %p5261_p6 = por %p223_p3, %p46_p0 }
   0xc   : > { %p5266_p8 = pnand %p3475_p5, %p230_p7  ;;  %s5170_s14 = smov [#allocation5]  }
   0xd   : > { %s6443_s11 = scalar_select %p5256_p4, 1, 0 }
   0xe   : > { %s6444_s12 = scalar_select %p5261_p6, 1, 0 }
   0xf   : > { %s6446_s13 = scalar_select %p5266_p8, 1, 0 }
  0x10   : > { %6445 = sst [smem:[#allocation17_spill]] %s6444_s12  ;;  %s242_s15 = sshll.u32 %s5170_s14, 4  ;;  %s5270_s15 = int_to_ptr.vmem [resolvable:$true] %s242_s15 }
  0x11   : > { %p4752_p9 = pneg %p5266_p8  ;;  %s5171_s17 = smov [#allocation8]  }
  0x12   : > { %s274_s18 = sshll.u32 %s5171_s17, 4  ;;  %s5172_s19 = smov [#allocation7]   ;;  %s5281_s18 = int_to_ptr.vmem [resolvable:$true] %s274_s18 }
  0x13   : > { %p5277_p11 = pnand %p4752_p9, %p6434_p1  ;;  %s5283_s20 = sshll.u32 %s5172_s19, 4  ;;  %s259_s20 = int_to_ptr.vmem [resolvable:$true] %s5283_s20 }
  0x14   : > { %s4952_s23 = scalar_lea.hbm %s6426_s1, 1024 }
  0x15   : > { %p4953_p12 = scmp.ne.s32.totalorder %s6426_s1, %s4952_s23  ;;  %p5293_p13 = pneg %p5277_p11 }
  0x16   : > { %p4959_p5 = scmp.lt.u32.totalorder %s4952_s23, %s6426_s1 }
  0x17   : > { %p4955_p0 = pnand %p5293_p13, %p4953_p12 }
  0x19   : > { %p4956_p3 = pneg %p4955_p0 }
  0x1b   : > { %p4961_p7 = pnand %p4959_p5, %p4956_p3 }
  0x1d   : > { %4964 = shalt.err (!%p4961_p7)
}
  0x1e   : > { %s4965_s17 = scalar_lea.vmem %s5270_s15, 1024  ;;  %p4973_p2 = scmp.lt.s32.totalorder %s5270_s15, %s5270_s15 }
  0x1f   : > { %p4966_p9 = scmp.ne.s32.totalorder %s5270_s15, %s4965_s17  ;;  %p4974_p6 = scmp.lt.s32.totalorder %s4965_s17, %s4965_s17 }
  0x21   : > { %p4968_p10 = pnand %p4966_p9, %p5293_p13  ;;  %p4975_p12 = por %p4974_p6, %p4973_p2 }
  0x23   : > { %p4969_p1 = pneg %p4968_p10 }
  0x25   : > { %p4976_p0 = pnand %p4975_p12, %p4969_p1 }
  0x27   : > { %4979 = shalt.err (!%p4976_p0)
}
  0x28   : > { %s5173_s19 = smov 64   ;;  %s5174_s21 = smov 4  }
  0x29   : > { %4755 = dma.hbm_to_vmem [thread:$0]  (!%p5277_p11), %s6426_s1, 1024, %s5270_s15, [#allocation6], %s5173_s19, %s5173_s19, %s5174_s21  }
  0x2a   : > { %s4980_s10 = scalar_lea.hbm %s6430_s5, 1024 }
  0x2b   : > { %p4981_p1 = scmp.ne.s32.totalorder %s6430_s5, %s4980_s10  ;;  %p4987_p10 = scmp.lt.u32.totalorder %s4980_s10, %s6430_s5 }
  0x2d   : > { %p4983_p2 = pnand %p4981_p1, %p5293_p13 }
  0x2f   : > { %p4984_p6 = pneg %p4983_p2 }
  0x31   : > { %p4989_p3 = pnand %p4987_p10, %p4984_p6 }
  0x33   : > { %4992 = shalt.err (!%p4989_p3)
}
  0x34   : > { %s4993_s15 = scalar_lea.vmem %s5281_s18, 1024  ;;  %p5001_p12 = scmp.lt.s32.totalorder %s5281_s18, %s5281_s18 }
  0x35   : > { %p4994_p5 = scmp.ne.s32.totalorder %s5281_s18, %s4993_s15  ;;  %p5002_p0 = scmp.lt.s32.totalorder %s4993_s15, %s4993_s15 }
  0x37   : > { %p4996_p7 = pnand %p4994_p5, %p5293_p13  ;;  %p5003_p1 = por %p5002_p0, %p5001_p12 }
  0x39   : > { %p4997_p9 = pneg %p4996_p7 }
  0x3b   : > { %p5004_p2 = pnand %p5003_p1, %p4997_p9 }
  0x3d   : > { %5007 = shalt.err (!%p5004_p2)
}
  0x3e   : > { %4761 = dma.hbm_to_vmem [thread:$0]  (!%p5277_p11), %s6430_s5, 1024, %s5281_s18, [#allocation9], %s5173_s19, %s5173_s19, %s5174_s21  }
  0x3f   : > { %s5008_s24 = scalar_lea.hbm %s6428_s3, 9216 }
  0x40   : > { %p5009_p6 = scmp.ne.s32.totalorder %s6428_s3, %s5008_s24  ;;  %p5015_p5 = scmp.lt.u32.totalorder %s5008_s24, %s6428_s3 }
  0x42   : > { %p5011_p10 = pnand %p5009_p6, %p5293_p13 }
  0x44   : > { %p5012_p3 = pneg %p5011_p10 }
  0x46   : > { %p5017_p7 = pnand %p5015_p5, %p5012_p3 }
  0x48   : > { %5020 = shalt.err (!%p5017_p7)
}
  0x49   : > { %s5021_s15 = scalar_lea.vmem %s259_s20, 9216  ;;  %p5029_p1 = scmp.lt.s32.totalorder %s259_s20, %s259_s20 }
  0x4a   : > { %p5022_p9 = scmp.ne.s32.totalorder %s259_s20, %s5021_s15  ;;  %p5030_p2 = scmp.lt.s32.totalorder %s5021_s15, %s5021_s15 }
  0x4c   : > { %p5024_p12 = pnand %p5022_p9, %p5293_p13  ;;  %p5031_p4 = por %p5030_p2, %p5029_p1 }
  0x4e   : > { %p5025_p0 = pneg %p5024_p12 }
  0x50   : > { %p5032_p8 = pnand %p5031_p4, %p5025_p0 }
  0x52   : > { %5035 = shalt.err (!%p5032_p8)
}
  0x53   : > { %4758 = dma.hbm_to_vmem [thread:$0]  (!%p5277_p11), %s6428_s3, 9216, %s259_s20, [#allocation6], %s5173_s19, %s5173_s19, %s5174_s21  }
  0x54   : > { %s5175_s12 = smov [#allocation10]   ;;  %s5036_s25 = scalar_lea.hbm %s6431_s6, 1024 }
  0x55   : > { %s287_s22 = sshll.u32 %s5175_s12, 4  ;;  %p5037_p4 = scmp.ne.s32.totalorder %s6431_s6, %s5036_s25  ;;  %s288_s22 = int_to_ptr.vmem [resolvable:$true] %s287_s22 }
  0x56   : > { %p5043_p10 = scmp.lt.u32.totalorder %s5036_s25, %s6431_s6 }
  0x57   : > { %p5039_p8 = pnand %p5037_p4, %p5293_p13 }
  0x59   : > { %p5040_p6 = pneg %p5039_p8 }
  0x5b   : > { %p5045_p3 = pnand %p5043_p10, %p5040_p6 }
  0x5d   : > { %5048 = shalt.err (!%p5045_p3)
}
  0x5e   : > { %s5049_s20 = scalar_lea.vmem %s288_s22, 1024  ;;  %p5057_p12 = scmp.lt.s32.totalorder %s288_s22, %s288_s22 }
  0x5f   : > { %p5050_p5 = scmp.ne.s32.totalorder %s288_s22, %s5049_s20  ;;  %p5058_p0 = scmp.lt.s32.totalorder %s5049_s20, %s5049_s20 }
  0x61   : > { %p5052_p7 = pnand %p5050_p5, %p5293_p13  ;;  %p5059_p1 = por %p5058_p0, %p5057_p12 }
  0x63   : > { %p5053_p9 = pneg %p5052_p7 }
  0x65   : > { %p5060_p2 = pnand %p5059_p1, %p5053_p9 }
  0x67   : > { %5063 = shalt.err (!%p5060_p2)
}
  0x68   : > { %4764 = dma.hbm_to_vmem [thread:$0]  (!%p5277_p11), %s6431_s6, 1024, %s288_s22, [#allocation9], %s5173_s19, %s5173_s19, %s5174_s21  }
  0x69   : > { %s5387_s26 = sadd.s32 1, %s5168_s30   ;;  %s33_s16 = sadd.s32 1, %s5164_s29 }
  0x6a   : > { %s30_s12 = ssub.s32 %s5168_s30, %s5387_s26  ;;  %p40_p13 = scmp.ne.s32.totalorder %s5164_s29, %s5160_s28 }
  0x6b   : > { %p31_p4 = scmp.eq.s32.totalorder %s30_s12, 0  ;;  %p41_p8 = scmp.eq.s32.totalorder %s5168_s30, 0 }
  0x6c   : > { %p6449_p6 = scmp.eq.s32.totalorder %s5247_s9, 1  ;;  %p4777_p3 = scmp.lt.s32.totalorder %s5168_s30, 2 }
  0x6d   : > { %s5403_s24 = scalar_select %p31_p4, %s5164_s29, %s33_s16  }
  0x6e   : > { %p5397_p10 = por %p6449_p6, %p40_p13  ;;  %p42_p5 = por %p41_p8, %p40_p13 }
  0x6f   : > { %s304_s25 = sand.u32 1, %s5164_s29   ;;  %s3643_s22 = sshll.u32 %s5168_s30, 11 }
  0x70   : > { %s3481_s10 = sshll.u32 %s304_s25, 7  ;;  %s5410_s15 = scalar_lea.hbm %s6425_s0, %s3643_s22 }
  0x71   : > { %s308_s20 = scalar_lea.vmem [#allocation2], %s3481_s10  ;;  %p5414_p11 = pnand %p4777_p3, %p42_p5 }
  0x72   : > { %s315_s18 = sshll.u32 %s308_s20, 4  ;;  %s5418_s16 = scalar_lea.sflag [#allocation3], %s304_s25  ;;  %s5412_s18 = int_to_ptr.vmem [resolvable:$true] %s315_s18 }
  0x73   : > { %s5064_s12 = scalar_lea.hbm %s5410_s15, 2048  ;;  %p5066_p9 = pneg %p5414_p11 }
  0x74   : > { %p5065_p7 = scmp.ne.s32.totalorder %s5410_s15, %s5064_s12  ;;  %s5069_s14 = scalar_lea.hbm %s6425_s0, 4096 }
  0x75   : > { %p5070_p1 = scmp.lt.u32.totalorder %s5410_s15, %s6425_s0  ;;  %p5071_p2 = scmp.lt.u32.totalorder %s5069_s14, %s5064_s12 }
  0x76   : > { %p5067_p12 = pnand %p5066_p9, %p5065_p7  ;;  %p5073_p4 = scmp.lt.u32.totalorder %s5064_s12, %s5410_s15 }
  0x77   : > { %p5072_p13 = por %p5071_p2, %p5070_p1 }
  0x78   : > { %p5068_p0 = pneg %p5067_p12 }
  0x79   : > { %p5074_p8 = por %p5073_p4, %p5072_p13 }
  0x7b   : > { %p5075_p6 = pnand %p5074_p8, %p5068_p0 }
  0x7d   : > { %5078 = shalt.err (!%p5075_p6)
}
  0x7e   : > { %s5079_s25 = scalar_lea.vmem %s5412_s18, 2048  ;;  %s5176_s10 = smov [#allocation2]  }
  0x7f   : > { %p5080_p3 = scmp.ne.s32.totalorder %s5412_s18, %s5079_s25  ;;  %s5084_s22 = sshll.u32 %s5176_s10, 4  ;;  %s5085_s22 = int_to_ptr.vmem [resolvable:$false] %s5084_s22 }
  0x80   : > { %s5086_s17 = scalar_lea.vmem %s5085_s22, 4096  ;;  %p5087_p12 = scmp.lt.s32.totalorder %s5412_s18, %s5085_s22 }
  0x81   : > { %p5082_p5 = pnand %p5080_p3, %p5066_p9  ;;  %p5088_p1 = scmp.lt.s32.totalorder %s5086_s17, %s5079_s25 }
  0x83   : > { %p5083_p7 = pneg %p5082_p5  ;;  %p5089_p2 = por %p5088_p1, %p5087_p12 }
  0x85   : > { %p5090_p13 = pnand %p5089_p2, %p5083_p7 }
  0x87   : > { %5093 = shalt.err (!%p5090_p13)
}
  0x88   : > { %4768 = dma.hbm_to_vmem [thread:$0]  (!%p5414_p11), %s5410_s15, 2048, %s5412_s18, %s5418_s16, %s5173_s19, %s5173_s19, %s5174_s21  }
  0x89   : > { %p6452_p9 = scmp.ne.s32.totalorder %s6446_s13, 0 }
  0x8a   : > { %s5452_s12 = sand.u32 (!%p6452_p9), 1, %s5160_s28   ;;  %p6453_p0 = scmp.ne.s32.totalorder (!%p6452_p9), %s6443_s11, 0 }
  0x8b   : > { %327 = sbr.rel (%p6452_p9) target bundleno = 1188 (0x4a4), region = 52  ;;  %s3485_s14 = sshll.u32 (!%p6452_p9), %s5452_s12, 7 }
  0x8c   : > { %s330_s20 = scalar_lea.sflag (!%p6452_p9), [#allocation3], %s5452_s12  ;;  %s5458_s27 = scalar_lea.vmem (!%p6452_p9), [#allocation2], %s3485_s14 }
  0x92   : > { %5139 = dma.done.wait (%p6453_p0), %s330_s20, 2048  }
  0x93   : > { %5141 = vsyncadd (%p6453_p0), %s330_s20, 4294965248  ;;  %p6454_p11 = scmp.eq.s32.totalorder %s5247_s9, 0 }
  0x95   : > { %5143 = dma.done.wait (%p6454_p11), [#allocation6], 10240   ;;  %p6455_p4 = pmov %p6454_p11 }
  0x97   : > { %5145 = vsyncadd (%p6455_p4), [#allocation6], 4294957056  ;;  %p6456_p8 = pmov %p6455_p4 }
  0x98   : > { %p6457_p6 = pmov %p6455_p4 }
  0x99   : > { %5147 = dma.done.wait (%p6456_p8), [#allocation9], 2048  }
  0x9a   : > { %5149 = vsyncadd (%p6457_p6), [#allocation9], 4294965248  ;;  %v4824_v0 = vld [vmem:[#allocation5] sm:$0xff]   ;;  %v4825_v1 = vld [vmem:[#allocation5 + $0x8] sm:$0xff]   ;;  %vm919_vm0 = vcmask 1040384   ;;  %vm986_vm2 = vcmask 1047552  }
  0x9b   : > { %4252 = vmatprep.subr.bf16.mxu0 %v4824_v0  ;;  %v4826_v2 = vld [vmem:[#allocation5 + $0x10] sm:$0xff]   ;;  %v4827_v3 = vld [vmem:[#allocation5 + $0x18] sm:$0xff]   ;;  %v4832_v4 = vld [vmem:[%s5458_s27] sm:$0xff]   ;;  %vm920_vm1 = vsmask.f32 256  ;;  %s6328_s16 = scalar_lea.vmem [#allocation11], %s3485_s14 }
  0x9c   : > { %4253 = vmatpush3.bf16.msra.mxu0 %v4824_v0  ;;  %4268 = vmatprep.mubr.bf16.mxu0 %v4832_v4  ;;  %v4828_v5 = vld [vmem:[#allocation5 + $0x20] sm:$0xff]   ;;  %v4829_v6 = vld [vmem:[#allocation5 + $0x28] sm:$0xff]   ;;  %v4830_v7 = vld [vmem:[#allocation5 + $0x30] sm:$0xff]   ;;  %vm987_vm3 = vsmask.f32 7424  ;;  %s3676_s25 = sshll.u32 %s5247_s9, 11 }
  0x9d   : > { %4254 = vmatprep.subr.bf16.mxu0 %v4825_v1  ;;  %v4831_v8 = vld [vmem:[#allocation5 + $0x38] sm:$0xff]   ;;  %v4848_v9 = vld [vmem:[#allocation7 + $0x140] sm:$0xff]   ;;  %v4833_v10 = vld [vmem:[%s5458_s27 + $0x8] sm:$0xff]   ;;  %s3363_s10 = sshll.u32 %s6328_s16, 4  ;;  %s6377_s14 = scalar_lea.hbm %s6433_s8, %s3676_s25  ;;  %s6379_s10 = int_to_ptr.vmem [resolvable:$true] %s3363_s10 }
  0x9e   : > { %v4852_v11 = vld [vmem:[#allocation7 + $0x100] sm:$0xff]   ;;  %v4834_v12 = vld [vmem:[%s5458_s27 + $0x10] sm:$0xff]   ;;  %v4849_v13 = vld [vmem:[#allocation7 + $0x148] sm:$0xff]   ;;  %s3350_s9 = scalar_lea.sflag [#allocation4], %s5452_s12  ;;  %s5094_s20 = scalar_lea.vmem %s6379_s10, 2048 }
  0x9f   : > { %3796 = vmatprep.subr.bf16.mxu1 %v4852_v11  ;;  %v4854_v14 = vld [vmem:[#allocation7 + $0xc0] sm:$0xff]   ;;  %v4855_v15 = vld [vmem:[#allocation7 + $0x108] sm:$0xff]   ;;  %v4857_v17 = vld [vmem:[#allocation7 + $0x110] sm:$0xff]   ;;  %p5095_p3 = scmp.ne.s32.totalorder %s6379_s10, %s5094_s20 }
  0xa0   : > { %4255 = vmatpush3.bf16.msra.mxu0 %v4825_v1  ;;  %3797 = vmatpush3.bf16.msra.mxu1 %v4854_v14  ;;  %v4856_v16 = vld [vmem:[#allocation7 + $0xc8] sm:$0xff]   ;;  %v4850_v18 = vld [vmem:[#allocation7 + $0x150] sm:$0xff]   ;;  %v4835_v19 = vld [vmem:[%s5458_s27 + $0x18] sm:$0xff]  }
  0xa1   : > { %4256 = vmatprep.subr.bf16.mxu0 %v4826_v2  ;;  %3798 = vmatprep.subr.bf16.mxu1 %v4855_v15  ;;  %v4859_v20 = vld [vmem:[#allocation7 + $0xd0] sm:$0xff]   ;;  %v4836_v21 = vld [vmem:[%s5458_s27 + $0x20] sm:$0xff]   ;;  %v4860_v22 = vld [vmem:[#allocation7 + $0x118] sm:$0xff]   ;;  %p5096_p5 = pnand %p5095_p3, %p5397_p10 }
  0xa2   : > { %v4851_v23 = vld [vmem:[#allocation7 + $0x158] sm:$0xff]   ;;  %v4853_v25 = vld [vmem:[#allocation7 + $0x160] sm:$0xff]   ;;  %v4837_v26 = vld [vmem:[%s5458_s27 + $0x28] sm:$0xff]  }
  0xa3   : > { %v4861_v24 = vld [vmem:[#allocation7 + $0xd8] sm:$0xff]   ;;  %v4838_v27 = vld [vmem:[%s5458_s27 + $0x30] sm:$0xff]   ;;  %v4858_v28 = vld [vmem:[#allocation7 + $0x168] sm:$0xff]   ;;  %p5097_p7 = pneg %p5096_p5 }
  0xa4   : > { %4257 = vmatpush3.bf16.msra.mxu0 %v4826_v2  ;;  %3799 = vmatpush3.bf16.msra.mxu1 %v4856_v16  ;;  %v4839_v29 = vld [vmem:[%s5458_s27 + $0x38] sm:$0xff]   ;;  %v4840_v30 = vld [vmem:[%s5458_s27 + $0x40] sm:$0xff]   ;;  %v4841_v31 = vld [vmem:[%s5458_s27 + $0x48] sm:$0xff]  }
  0xa5   : > { %4258 = vmatprep.subr.bf16.mxu0 %v4827_v3  ;;  %3800 = vmatprep.subr.bf16.mxu1 %v4857_v17  ;;  %v4842_v32 = vld [vmem:[%s5458_s27 + $0x50] sm:$0xff]   ;;  %v4843_v33 = vld [vmem:[%s5458_s27 + $0x58] sm:$0xff]   ;;  %v4844_v34 = vld [vmem:[%s5458_s27 + $0x60] sm:$0xff]  }
  0xa6   : > { %v4845_v35 = vld [vmem:[%s5458_s27 + $0x68] sm:$0xff]   ;;  %v4846_v36 = vld [vmem:[%s5458_s27 + $0x70] sm:$0xff]   ;;  %v4847_v37 = vld [vmem:[%s5458_s27 + $0x78] sm:$0xff]  }
  0xa7   : > { %v4862_v38 = vld [vmem:[#allocation7 + $0x120] sm:$0xff]   ;;  %v4865_v40 = vld [vmem:[#allocation7 + $0x128] sm:$0xff]   ;;  %v4863_v41 = vld [vmem:[#allocation7 + $0x170] sm:$0xff]  }
  0xa8   : > { %4259 = vmatpush3.bf16.msra.mxu0 %v4827_v3  ;;  %3801 = vmatpush3.bf16.msra.mxu1 %v4859_v20  ;;  %v4864_v39 = vld [vmem:[#allocation7 + $0xe0] sm:$0xff]   ;;  %v4866_v42 = vld [vmem:[#allocation7 + $0xe8] sm:$0xff]   ;;  %v4867_v43 = vld [vmem:[#allocation7 + $0x130] sm:$0xff]  }
  0xa9   : > { %4260 = vmatprep.subr.bf16.mxu0 %v4828_v5  ;;  %3802 = vmatprep.subr.bf16.mxu1 %v4860_v22  ;;  %v4869_v44 = vld [vmem:[#allocation7 + $0xf0] sm:$0xff]   ;;  %v4870_v45 = vld [vmem:[#allocation7 + $0x138] sm:$0xff]   ;;  %v4872_v48 = vld [vmem:[#allocation7 + $0x40] sm:$0xff]  }
  0xaa   : > { %v4868_v46 = vld [vmem:[#allocation7 + $0x178] sm:$0xff]   ;;  %v4888_v49 = vld [vmem:[#allocation7 + $0x1c0] sm:$0xff]   ;;  %vm5512_vm4 = vmand %vm919_vm0, %vm920_vm1 }
  0xab   : > { %v4871_v47 = vld [vmem:[#allocation7 + $0xf8] sm:$0xff]   ;;  %v5491_v50 = vld [vmem:[%s6427_s2] ss:$0 sm:$0xff]  ;;  %vm5517_vm5 = vmand %vm986_vm2, %vm987_vm3 }
  0xac   : > { %4261 = vmatpush3.bf16.msra.mxu0 %v4828_v5  ;;  %3803 = vmatpush3.bf16.msra.mxu1 %v4861_v24  ;;  %v4921_v15 = vld [vmem:[#allocation10 + $0x8] sm:$0xff]  }
  0xad   : > { %4262 = vmatprep.subr.bf16.mxu0 %v4829_v6  ;;  %3804 = vmatprep.subr.bf16.mxu1 %v4862_v38 }
  0xb0   : > { %4263 = vmatpush3.bf16.msra.mxu0 %v4829_v6  ;;  %3805 = vmatpush3.bf16.msra.mxu1 %v4864_v39 }
  0xb1   : > { %4264 = vmatprep.subr.bf16.mxu0 %v4830_v7  ;;  %3806 = vmatprep.subr.bf16.mxu1 %v4865_v40 }
  0xb4   : > { %4265 = vmatpush3.bf16.msra.mxu0 %v4830_v7  ;;  %3807 = vmatpush3.bf16.msra.mxu1 %v4866_v42 }
  0xb5   : > { %4266 = vmatprep.subr.bf16.mxu0 %v4831_v8  ;;  %3808 = vmatprep.subr.bf16.mxu1 %v4867_v43 }
  0xb8   : > { %4267 = vmatpush3.bf16.msra.mxu0 %v4831_v8  ;;  %3809 = vmatpush3.bf16.msra.mxu1 %v4869_v44 }
  0xb9   : > { %4300 = vmatprep.subr.bf16.mxu0 %v4848_v9  ;;  %3810 = vmatprep.subr.bf16.mxu1 %v4870_v45 }
  0xbb   : > { %4269 = vmatmul.mubr.bf16.vlgmr.msra.gmra.mrb[0].mxu0 %v4833_v10 }
  0xbc   : > { %4272 = vmatprep.mubr.bf16.mxu0 %v4834_v12  ;;  %4301 = vmatpush3.bf16.msra.mxu0 %v4848_v9 }
  0xbd   : > { %4302 = vmatprep.subr.bf16.mxu0 %v4849_v13  ;;  %3811 = vmatpush3.bf16.msra.mxu1 %v4871_v47  ;;  %v4892_v47 = vld [vmem:[#allocation7 + $0x188] sm:$0xff]  }
  0xbe   : > { %4068 = vmatprep.subr.bf16.mxu1 %v4888_v49 }
  0xc0   : > { %4303 = vmatpush3.bf16.msra.mxu0 %v4849_v13 }
  0xc1   : > { %4304 = vmatprep.subr.bf16.mxu0 %v4850_v18 }
  0xc3   : > { %4273 = vmatmul.mubr.bf16.gmra.mrb[4].mxu0 %v4835_v19  ;;  %v4893_v19 = vld [vmem:[#allocation7 + $0x88] sm:$0xff]  }
  0xc4   : > { %4276 = vmatprep.mubr.bf16.mxu0 %v4836_v21  ;;  %4305 = vmatpush3.bf16.msra.mxu0 %v4850_v18 }
  0xc5   : > { %4306 = vmatprep.subr.bf16.mxu0 %v4851_v23 }
  0xc8   : > { %4307 = vmatpush3.bf16.msra.mxu0 %v4851_v23 }
  0xc9   : > { %4308 = vmatprep.subr.bf16.mxu0 %v4853_v25 }
  0xcb   : > { %4277 = vmatmul.mubr.bf16.gmra.mrb[8].mxu0 %v4837_v26  ;;  %v4873_v26 = vld [vmem:[#allocation7] sm:$0xff]  }
  0xcc   : > { %4280 = vmatprep.mubr.bf16.mxu0 %v4838_v27  ;;  %4309 = vmatpush3.bf16.msra.mxu0 %v4853_v25  ;;  %v4889_v27 = vld [vmem:[#allocation7 + $0x180] sm:$0xff]  }
  0xcd   : > { %4310 = vmatprep.subr.bf16.mxu0 %v4858_v28 }
  0xd0   : > { %4311 = vmatpush3.bf16.msra.mxu0 %v4858_v28 }
  0xd1   : > { %4312 = vmatprep.subr.bf16.mxu0 %v4863_v41 }
  0xd3   : > { %4281 = vmatmul.mubr.bf16.gmra.mrb[12].mxu0 %v4839_v29 }
  0xd4   : > { %4284 = vmatprep.mubr.bf16.mxu0 %v4840_v30  ;;  %4313 = vmatpush3.bf16.msra.mxu0 %v4863_v41 }
  0xd5   : > { %4314 = vmatprep.subr.bf16.mxu0 %v4868_v46 }
  0xd8   : > { %4315 = vmatpush3.bf16.msra.mxu0 %v4868_v46  ;;  %v4875_v46 = vld [vmem:[#allocation7 + $0x8] sm:$0xff]  }
  0xd9   : > { %3932 = vmatprep.subr.bf16.mxu0 %v4872_v48 }
  0xdb   : > { %4285 = vmatmul.mubr.bf16.gmra.mrb[16].mxu0 %v4841_v31 }
  0xdc   : > { %4288 = vmatprep.mubr.bf16.mxu0 %v4842_v32 }
  0xe3   : > { %4289 = vmatmul.mubr.bf16.gmra.mrb[20].mxu0 %v4843_v33  ;;  %v4874_v33 = vld [vmem:[#allocation7 + $0x48] sm:$0xff]  }
  0xe4   : > { %4292 = vmatprep.mubr.bf16.mxu0 %v4844_v34  ;;  %v4891_v34 = vld [vmem:[#allocation7 + $0x1c8] sm:$0xff]  }
  0xeb   : > { %4293 = vmatmul.mubr.bf16.gmra.mrb[24].mxu0 %v4845_v35 }
  0xec   : > { %4296 = vmatprep.mubr.bf16.mxu0 %v4846_v36 }
  0xf3   : > { %4297 = vmatmul.mubr.bf16.gmra.mrb[28].mxu0 %v4847_v37 }
 0x18e   : > { %v4270_v51 = vpop.f32.mrb[0].mxu0 }
 0x18f   : > { %v625_v52 = vadd.f32 %v4270_v51, %v5491_v50  ;;  %v616_v53 = vpop.f32.mrb[1].mxu0 }
 0x190   : > { %v617_v54 = vadd.f32 %v5491_v50, %v616_v53  ;;  %v4271_v55 = vpop.f32.mrb[2].mxu0  ;;  %v4876_v53 = vld [vmem:[#allocation7 + $0x50] sm:$0xff]  }
 0x191   : > { %v628_v56 = vadd.f32 %v4271_v55, %v5491_v50  ;;  %v619_v57 = vpop.f32.mrb[3].mxu0  ;;  %v745_v59 = vmax.f32 %v625_v52, 0.0 }
 0x192   : > { %v620_v58 = vadd.f32 %v5491_v50, %v619_v57  ;;  %v743_v61 = vmax.f32 %v617_v54, 0.0  ;;  %v4894_v54 = vld [vmem:[#allocation7 + $0x1d0] sm:$0xff]  }
 0x193   : > { %v746_v60 = vmax.f32 %v628_v56, 0.0 }
 0x194   : > { %v744_v62 = vmax.f32 %v620_v58, 0.0 }
 0x195   : > { %v5497_v63 = vpack.c.bf16 %v746_v60, %v745_v59 }
 0x196   : > { %v5499_v0 = vpack.c.bf16 %v744_v62, %v743_v61  ;;  %v4274_v1 = vpop.f32.mrb[4].mxu0  ;;  %v4877_v62 = vld [vmem:[#allocation7 + $0x10] sm:$0xff]  }
 0x197   : > { %v641_v2 = vadd.f32 %v4274_v1, %v5491_v50  ;;  %v632_v3 = vpop.f32.mrb[5].mxu0  ;;  %v802_v4 = vshll.u32 %v5497_v63, 16  ;;  %v799_v11 = vshrl.u32 %v5497_v63, 16  ;;  %v4895_v1 = vld [vmem:[#allocation7 + $0x190] sm:$0xff]  }
 0x198   : > { %v633_v5 = vadd.f32 %v5491_v50, %v632_v3  ;;  %v4275_v6 = vpop.f32.mrb[6].mxu0  ;;  %1278 = vmatprep.mubr.bf16.mxu1 %v5499_v0  ;;  %v792_v7 = vshrl.u32 %v5499_v0, 16  ;;  %v795_v8 = vshll.u32 %v5499_v0, 16 }
 0x199   : > { %v644_v9 = vadd.f32 %v4275_v6, %v5491_v50  ;;  %v635_v10 = vpop.f32.mrb[7].mxu0  ;;  %v940_v12 = vrot.slane %v802_v4, 1  ;;  %v749_v17 = vmax.f32 %v641_v2, 0.0  ;;  %v801_v32 = vrot.slane %v799_v11, 7 }
 0x19a   : > { %v636_v13 = vadd.f32 %v5491_v50, %v635_v10  ;;  %v794_v14 = vrot.slane %v792_v7, 7  ;;  %v938_v16 = vrot.slane %v795_v8, 1  ;;  %v747_v21 = vmax.f32 %v633_v5, 0.0 }
 0x19b   : > { %v750_v18 = vmax.f32 %v644_v9, 0.0  ;;  %v941_v20 = vor.u32 %v940_v12, %v799_v11  ;;  %v804_v49 = vor.u32 %v802_v4, %v801_v32  ;;  %v4880_v32 = vld [vmem:[#allocation7 + $0x60] sm:$0xff]  }
 0x19c   : > { %v748_v22 = vmax.f32 %v636_v13, 0.0  ;;  %v797_v23 = vor.u32 %v795_v8, %v794_v14  ;;  %v939_v24 = vor.u32 %v938_v16, %v792_v7  ;;  %v4878_v7 = vld [vmem:[#allocation7 + $0x58] sm:$0xff]  }
 0x19d   : > { %v5521_v25 = vpack.c.bf16 %v750_v18, %v749_v17  ;;  %v5538_v37 = vsel %vm5517_vm5, %v941_v20, 0  ;;  %v5559_v4 = vsel %vm5512_vm4, 0, %v804_v49  ;;  %v4897_v8 = vld [vmem:[#allocation7 + $0x1d8] sm:$0xff]  }
 0x19e   : > { %v5523_v28 = vpack.c.bf16 %v748_v22, %v747_v21  ;;  %v4278_v29 = vpop.f32.mrb[8].mxu0  ;;  %v5527_v30 = vsel %vm5512_vm4, 0, %v797_v23  ;;  %v5531_v31 = vsel %vm5517_vm5, %v939_v24, 0  ;;  %v4879_v22 = vld [vmem:[#allocation7 + $0x18] sm:$0xff]  }
 0x19f   : > { %v657_v35 = vadd.f32 %v4278_v29, %v5491_v50  ;;  %v648_v36 = vpop.f32.mrb[9].mxu0  ;;  %1279 = vmatmul.mubr.bf16.vlgmr.msra.gmra.mrb[0].mxu1 %v5527_v30  ;;  %4316 = vmatprep.mubr.bf16.mxu0 %v5531_v31  ;;  %v816_v38 = vshll.u32 %v5521_v25, 16  ;;  %v813_v44 = vshrl.u32 %v5521_v25, 16  ;;  %v4898_v23 = vld [vmem:[#allocation7 + $0x198] sm:$0xff]  }
 0x1a0   : > { %v649_v39 = vadd.f32 %v5491_v50, %v648_v36  ;;  %v4279_v40 = vpop.f32.mrb[10].mxu0  ;;  %1286 = vmatprep.mubr.bf16.mxu1 %v5497_v63  ;;  %4317 = vmatmul.mubr.bf16.vlgmr.msra.gmra.mrb[32].mxu0 %v5538_v37  ;;  %v809_v41 = vshll.u32 %v5523_v28, 16  ;;  %v806_v51 = vshrl.u32 %v5523_v28, 16 }
 0x1a1   : > { %v660_v42 = vadd.f32 %v4279_v40, %v5491_v50  ;;  %3933 = vmatpush3.bf16.msra.mxu0 %v4873_v26  ;;  %v651_v43 = vpop.f32.mrb[11].mxu0  ;;  %v944_v45 = vrot.slane %v816_v38, 1  ;;  %4069 = vmatpush3.bf16.msra.mxu1 %v4889_v27  ;;  %v753_v55 = vmax.f32 %v657_v35, 0.0 }
 0x1a2   : > { %v652_v48 = vadd.f32 %v5491_v50, %v651_v43  ;;  %v942_v52 = vrot.slane %v809_v41, 1  ;;  %3934 = vmatprep.subr.bf16.mxu0 %v4874_v33  ;;  %4070 = vmatprep.subr.bf16.mxu1 %v4891_v34  ;;  %v751_v58 = vmax.f32 %v649_v39, 0.0  ;;  %v808_v6 = vrot.slane %v806_v51, 7  ;;  %v4900_v33 = vld [vmem:[#allocation7 + $0x1e0] sm:$0xff]  }
 0x1a3   : > { %v754_v56 = vmax.f32 %v660_v42, 0.0  ;;  %v945_v57 = vor.u32 %v944_v45, %v813_v44  ;;  %v4881_v43 = vld [vmem:[#allocation7 + $0x20] sm:$0xff]  }
 0x1a4   : > { %v752_v59 = vmax.f32 %v652_v48, 0.0  ;;  %v943_v60 = vor.u32 %v942_v52, %v806_v51  ;;  %v811_v26 = vor.u32 %v809_v41, %v808_v6  ;;  %v4901_v45 = vld [vmem:[#allocation7 + $0x1a0] sm:$0xff]   ;;  %v815_v51 = vrot.slane %v813_v44, 7  ;;  %v4882_v52 = vld [vmem:[#allocation7 + $0x68] sm:$0xff]  }
 0x1a5   : > { %v5553_v61 = vpack.c.bf16 %v754_v56, %v753_v55  ;;  %3935 = vmatpush3.bf16.msra.mxu0 %v4875_v46  ;;  %4071 = vmatpush3.bf16.msra.mxu1 %v4892_v47  ;;  %v5570_v11 = vsel %vm5517_vm5, %v945_v57, 0  ;;  %v4883_v6 = vld [vmem:[#allocation7 + $0x28] sm:$0xff]  }
 0x1a6   : > { %v5555_v2 = vpack.c.bf16 %v752_v59, %v751_v58  ;;  %v4282_v3 = vpop.f32.mrb[12].mxu0  ;;  %v5563_v5 = vsel %vm5517_vm5, %v943_v60, 0  ;;  %3936 = vmatprep.subr.bf16.mxu0 %v4876_v53  ;;  %4072 = vmatprep.subr.bf16.mxu1 %v4894_v54  ;;  %v5595_v48 = vsel %vm5512_vm4, 0, %v811_v26  ;;  %v4902_v53 = vld [vmem:[#allocation7 + $0x1e8] sm:$0xff]  }
 0x1a7   : > { %v673_v9 = vadd.f32 %v4282_v3, %v5491_v50  ;;  %v664_v10 = vpop.f32.mrb[13].mxu0  ;;  %1287 = vmatmul.mubr.bf16.gmra.mrb[4].mxu1 %v5559_v4  ;;  %4320 = vmatprep.mubr.bf16.mxu0 %v5563_v5  ;;  %v830_v12 = vshll.u32 %v5553_v61, 16  ;;  %v827_v20 = vshrl.u32 %v5553_v61, 16 }
 0x1a8   : > { %v665_v13 = vadd.f32 %v5491_v50, %v664_v10  ;;  %v4283_v14 = vpop.f32.mrb[14].mxu0  ;;  %1294 = vmatprep.mubr.bf16.mxu1 %v5523_v28  ;;  %4321 = vmatmul.mubr.bf16.gmra.mrb[36].mxu0 %v5570_v11  ;;  %v823_v16 = vshll.u32 %v5555_v2, 16  ;;  %v820_v27 = vshrl.u32 %v5555_v2, 16 }
 0x1a9   : > { %v676_v17 = vadd.f32 %v4283_v14, %v5491_v50  ;;  %v667_v18 = vpop.f32.mrb[15].mxu0  ;;  %v948_v21 = vrot.slane %v830_v12, 1  ;;  %3937 = vmatpush3.bf16.msra.mxu0 %v4877_v62  ;;  %4073 = vmatpush3.bf16.msra.mxu1 %v4895_v1  ;;  %v757_v34 = vmax.f32 %v673_v9, 0.0  ;;  %v818_v9 = vor.u32 %v816_v38, %v815_v51  ;;  %v4884_v14 = vld [vmem:[#allocation7 + $0x70] sm:$0xff]  }
 0x1aa   : > { %v668_v24 = vadd.f32 %v5491_v50, %v667_v18  ;;  %v946_v29 = vrot.slane %v823_v16, 1  ;;  %3938 = vmatprep.subr.bf16.mxu0 %v4878_v7  ;;  %4074 = vmatprep.subr.bf16.mxu1 %v4897_v8  ;;  %v755_v39 = vmax.f32 %v665_v13, 0.0  ;;  %v4903_v7 = vld [vmem:[#allocation7 + $0x1a8] sm:$0xff]  }
 0x1ab   : > { %v758_v35 = vmax.f32 %v676_v17, 0.0  ;;  %v949_v36 = vor.u32 %v948_v21, %v827_v20  ;;  %v4904_v17 = vld [vmem:[#allocation7 + $0x1f0] sm:$0xff]  }
 0x1ac   : > { %v756_v40 = vmax.f32 %v668_v24, 0.0  ;;  %v947_v42 = vor.u32 %v946_v29, %v820_v27  ;;  %v4885_v29 = vld [vmem:[#allocation7 + $0x30] sm:$0xff]  }
 0x1ad   : > { %v5589_v41 = vpack.c.bf16 %v758_v35, %v757_v34  ;;  %3939 = vmatpush3.bf16.msra.mxu0 %v4879_v22  ;;  %4075 = vmatpush3.bf16.msra.mxu1 %v4898_v23  ;;  %v5608_v56 = vsel %vm5517_vm5, %v949_v36, 0  ;;  %v5635_v35 = vsel %vm5512_vm4, 0, %v818_v9  ;;  %v5665_v9 = vld [vmem:[#allocation7 + $0x80] sm:$0xff]  }
 0x1ae   : > { %v5591_v46 = vpack.c.bf16 %v756_v40, %v755_v39  ;;  %v4286_v47 = vpop.f32.mrb[16].mxu0  ;;  %v5599_v49 = vsel %vm5517_vm5, %v947_v42, 0  ;;  %3940 = vmatprep.subr.bf16.mxu0 %v4880_v32  ;;  %4076 = vmatprep.subr.bf16.mxu1 %v4900_v33  ;;  %v4905_v32 = vld [vmem:[#allocation7 + $0x1b0] sm:$0xff]   ;;  %v822_v39 = vrot.slane %v820_v27, 7  ;;  %v4886_v40 = vld [vmem:[#allocation7 + $0x78] sm:$0xff]  }
 0x1af   : > { %v689_v54 = vadd.f32 %v4286_v47, %v5491_v50  ;;  %v680_v55 = vpop.f32.mrb[17].mxu0  ;;  %1295 = vmatmul.mubr.bf16.gmra.mrb[8].mxu1 %v5595_v48  ;;  %4324 = vmatprep.mubr.bf16.mxu0 %v5599_v49  ;;  %v844_v57 = vshll.u32 %v5589_v41, 16  ;;  %v841_v1 = vshrl.u32 %v5589_v41, 16  ;;  %v4906_v42 = vld [vmem:[#allocation7 + $0x1f8] sm:$0xff]  }
 0x1b0   : > { %v681_v58 = vadd.f32 %v5491_v50, %v680_v55  ;;  %v4287_v44 = vpop.f32.mrb[18].mxu0  ;;  %1302 = vmatprep.mubr.bf16.mxu1 %v5521_v25  ;;  %4325 = vmatmul.mubr.bf16.gmra.mrb[40].mxu0 %v5608_v56  ;;  %v837_v59 = vshll.u32 %v5591_v46, 16  ;;  %v834_v10 = vshrl.u32 %v5591_v46, 16 }
 0x1b1   : > { %v692_v60 = vadd.f32 %v4287_v44, %v5491_v50  ;;  %v683_v62 = vpop.f32.mrb[19].mxu0  ;;  %v952_v3 = vrot.slane %v844_v57, 1  ;;  %3941 = vmatpush3.bf16.msra.mxu0 %v4881_v43  ;;  %4077 = vmatpush3.bf16.msra.mxu1 %v4901_v45  ;;  %v761_v18 = vmax.f32 %v689_v54, 0.0 }
 0x1b2   : > { %v684_v8 = vadd.f32 %v5491_v50, %v683_v62  ;;  %v950_v13 = vrot.slane %v837_v59, 1  ;;  %3942 = vmatprep.subr.bf16.mxu0 %v4882_v52  ;;  %4078 = vmatprep.subr.bf16.mxu1 %v4902_v53  ;;  %v759_v23 = vmax.f32 %v681_v58, 0.0  ;;  %v4907_v62 = vld [vmem:[#allocation7 + $0x1b8] sm:$0xff]  }
 0x1b3   : > { %v762_v21 = vmax.f32 %v692_v60, 0.0  ;;  %v953_v22 = vor.u32 %v952_v3, %v841_v1  ;;  %v4887_v60 = vld [vmem:[#allocation7 + $0x38] sm:$0xff]  }
 0x1b4   : > { %v760_v24 = vmax.f32 %v684_v8, 0.0  ;;  %v951_v26 = vor.u32 %v950_v13, %v834_v10 }
 0x1b5   : > { %v5629_v38 = vpack.c.bf16 %v762_v21, %v761_v18  ;;  %3943 = vmatpush3.bf16.msra.mxu0 %v4883_v6  ;;  %4079 = vmatpush3.bf16.msra.mxu1 %v4903_v7  ;;  %v5648_v47 = vsel %vm5517_vm5, %v953_v22, 0  ;;  %v825_v6 = vor.u32 %v823_v16, %v822_v39 }
 0x1b6   : > { %v5631_v33 = vpack.c.bf16 %v760_v24, %v759_v23  ;;  %v4290_v34 = vpop.f32.mrb[20].mxu0  ;;  %v5639_v36 = vsel %vm5517_vm5, %v951_v26, 0  ;;  %3944 = vmatprep.subr.bf16.mxu0 %v4884_v14  ;;  %4080 = vmatprep.subr.bf16.mxu1 %v4904_v17 }
 0x1b7   : > { %v705_v43 = vadd.f32 %v4290_v34, %v5491_v50  ;;  %v696_v45 = vpop.f32.mrb[21].mxu0  ;;  %1303 = vmatmul.mubr.bf16.gmra.mrb[12].mxu1 %v5635_v35  ;;  %4328 = vmatprep.mubr.bf16.mxu0 %v5639_v36  ;;  %v858_v51 = vshll.u32 %v5629_v38, 16  ;;  %v855_v58 = vshrl.u32 %v5629_v38, 16  ;;  %v5677_v26 = vsel %vm5512_vm4, 0, %v825_v6 }
 0x1b8   : > { %v697_v52 = vadd.f32 %v5491_v50, %v696_v45  ;;  %v4291_v27 = vpop.f32.mrb[22].mxu0  ;;  %1310 = vmatprep.mubr.bf16.mxu1 %v5555_v2  ;;  %4329 = vmatmul.mubr.bf16.gmra.mrb[44].mxu0 %v5648_v47  ;;  %v851_v53 = vshll.u32 %v5631_v33, 16  ;;  %v848_v7 = vshrl.u32 %v5631_v33, 16 }
 0x1b9   : > { %v708_v54 = vadd.f32 %v4291_v27, %v5491_v50  ;;  %v699_v55 = vpop.f32.mrb[23].mxu0  ;;  %v956_v44 = vrot.slane %v858_v51, 1  ;;  %3945 = vmatpush3.bf16.msra.mxu0 %v4885_v29  ;;  %4081 = vmatpush3.bf16.msra.mxu1 %v4905_v32  ;;  %v765_v13 = vmax.f32 %v705_v43, 0.0  ;;  %v829_v32 = vrot.slane %v827_v20, 7 }
 0x1ba   : > { %v700_v3 = vadd.f32 %v5491_v50, %v699_v55  ;;  %v954_v8 = vrot.slane %v851_v53, 1  ;;  %3946 = vmatprep.subr.bf16.mxu0 %v4886_v40  ;;  %4082 = vmatprep.subr.bf16.mxu1 %v4906_v42  ;;  %v763_v18 = vmax.f32 %v697_v52, 0.0 }
 0x1bb   : > { %v766_v14 = vmax.f32 %v708_v54, 0.0  ;;  %v957_v17 = vor.u32 %v956_v44, %v855_v58 }
 0x1bc   : > { %v764_v21 = vmax.f32 %v700_v3, 0.0  ;;  %v955_v22 = vor.u32 %v954_v8, %v848_v7 }
 0x1bd   : > { %v5671_v16 = vpack.c.bf16 %v766_v14, %v765_v13  ;;  %3947 = vmatpush3.bf16.msra.mxu0 %v4887_v60  ;;  %4083 = vmatpush3.bf16.msra.mxu1 %v4907_v62  ;;  %v5691_v40 = vsel %vm5517_vm5, %v957_v17, 0  ;;  %v832_v60 = vor.u32 %v830_v12, %v829_v32 }
 0x1be   : > { %v5673_v23 = vpack.c.bf16 %v764_v21, %v763_v18  ;;  %v4294_v24 = vpop.f32.mrb[24].mxu0  ;;  %v5681_v29 = vsel %vm5517_vm5, %v955_v22, 0  ;;  %4348 = vmatprep.subr.bf16.mxu0 %v5665_v9 }
 0x1bf   : > { %v721_v34 = vadd.f32 %v4294_v24, %v5491_v50  ;;  %v712_v39 = vpop.f32.mrb[25].mxu0  ;;  %1311 = vmatmul.mubr.bf16.gmra.mrb[16].mxu1 %v5677_v26  ;;  %4332 = vmatprep.mubr.bf16.mxu0 %v5681_v29  ;;  %v6439_v42 = vshll.u32 %v5671_v16, 16  ;;  %v6441_v54 = vshrl.u32 %v5671_v16, 16  ;;  %v5718_v24 = vsel %vm5512_vm4, 0, %v832_v60 }
 0x1c0   : > { %v713_v43 = vadd.f32 %v5491_v50, %v712_v39  ;;  %v4295_v45 = vpop.f32.mrb[26].mxu0  ;;  %1318 = vmatprep.mubr.bf16.mxu1 %v5553_v61  ;;  %4333 = vmatmul.mubr.bf16.gmra.mrb[48].mxu0 %v5691_v40  ;;  %v865_v20 = vshll.u32 %v5673_v23, 16  ;;  %v862_v62 = vshrl.u32 %v5673_v23, 16 }
 0x1c1   : > { %v724_v52 = vadd.f32 %v4295_v45, %v5491_v50  ;;  %v715_v27 = vpop.f32.mrb[27].mxu0  ;;  %v960_v55 = vrot.slane %v6439_v42, 1  ;;  %v769_v6 = vmax.f32 %v721_v34, 0.0  ;;  %v836_v34 = vrot.slane %v834_v10, 7 }
 0x1c2   : > { %v716_v44 = vadd.f32 %v5491_v50, %v715_v27  ;;  %v958_v3 = vrot.slane %v865_v20, 1  ;;  %v767_v14 = vmax.f32 %v713_v43, 0.0 }
 0x1c3   : > { %v770_v8 = vmax.f32 %v724_v52, 0.0  ;;  %v961_v13 = vor.u32 %v960_v55, %v6441_v54 }
 0x1c4   : > { %v768_v17 = vmax.f32 %v716_v44, 0.0  ;;  %v959_v18 = vor.u32 %v958_v3, %v862_v62 }
 0x1c5   : > { %v5712_v21 = vpack.c.bf16 %v770_v8, %v769_v6  ;;  %v5731_v45 = vsel %vm5517_vm5, %v961_v13, 0  ;;  %v839_v13 = vor.u32 %v837_v59, %v836_v34 }
 0x1c6   : > { %v5714_v22 = vpack.c.bf16 %v768_v17, %v767_v14  ;;  %v4298_v12 = vpop.f32.mrb[28].mxu0  ;;  %v5722_v32 = vsel %vm5517_vm5, %v959_v18, 0 }
 0x1c7   : > { %v737_v39 = vadd.f32 %v4298_v12, %v5491_v50  ;;  %v728_v43 = vpop.f32.mrb[29].mxu0  ;;  %1319 = vmatmul.mubr.bf16.gmra.mrb[20].mxu1 %v5718_v24  ;;  %4336 = vmatprep.mubr.bf16.mxu0 %v5722_v32  ;;  %v6440_v52 = vshll.u32 %v5712_v21, 16  ;;  %v883_v3 = vshrl.u32 %v5712_v21, 16  ;;  %v5758_v59 = vsel %vm5512_vm4, 0, %v839_v13 }
 0x1c8   : > { %v729_v27 = vadd.f32 %v5491_v50, %v728_v43  ;;  %v4299_v55 = vpop.f32.mrb[30].mxu0  ;;  %1326 = vmatprep.mubr.bf16.mxu1 %v5591_v46  ;;  %4337 = vmatmul.mubr.bf16.gmra.mrb[52].mxu0 %v5731_v45  ;;  %v879_v10 = vshll.u32 %v5714_v22, 16  ;;  %v876_v14 = vshrl.u32 %v5714_v22, 16 }
 0x1c9   : > { %v740_v44 = vadd.f32 %v4299_v55, %v5491_v50  ;;  %v731_v60 = vpop.f32.mrb[31].mxu0  ;;  %v964_v6 = vrot.slane %v6440_v52, 1  ;;  %v773_v18 = vmax.f32 %v737_v39, 0.0  ;;  %v843_v39 = vrot.slane %v841_v1, 7 }
 0x1ca   : > { %v732_v8 = vadd.f32 %v5491_v50, %v731_v60  ;;  %v962_v17 = vrot.slane %v879_v10, 1  ;;  %v771_v55 = vmax.f32 %v729_v27, 0.0 }
 0x1cb   : > { %v774_v12 = vmax.f32 %v740_v44, 0.0  ;;  %v965_v43 = vor.u32 %v964_v6, %v883_v3  ;;  %v846_v6 = vor.u32 %v844_v57, %v843_v39  ;;  %v850_v39 = vrot.slane %v848_v7, 7 }
 0x1cc   : > { %v772_v42 = vmax.f32 %v732_v8, 0.0  ;;  %v963_v52 = vor.u32 %v962_v17, %v876_v14 }
 0x1cd   : > { %v5752_v54 = vpack.c.bf16 %v774_v12, %v773_v18  ;;  %v5770_v27 = vsel %vm5517_vm5, %v965_v43, 0 }
 0x1ce   : > { %v5754_v50 = vpack.c.bf16 %v772_v42, %v771_v55  ;;  %v5762_v34 = vsel %vm5517_vm5, %v963_v52, 0  ;;  %v5790_v55 = vsel %vm5512_vm4, 0, %v846_v6  ;;  %v4896_v6 = vld [vmem:[#allocation7 + $0x90] sm:$0xff]  }
 0x1cf   : > { %1327 = vmatmul.mubr.bf16.gmra.mrb[24].mxu1 %v5758_v59  ;;  %4340 = vmatprep.mubr.bf16.mxu0 %v5762_v34  ;;  %v897_v42 = vshrl.u32 %v5752_v54, 16  ;;  %v900_v44 = vshll.u32 %v5752_v54, 16 }
 0x1d0   : > { %1334 = vmatprep.mubr.bf16.mxu1 %v5589_v41  ;;  %4341 = vmatmul.mubr.bf16.gmra.mrb[56].mxu0 %v5770_v27  ;;  %v893_v52 = vshll.u32 %v5754_v50, 16  ;;  %v890_v8 = vshrl.u32 %v5754_v50, 16 }
 0x1d1   : > { %v968_v60 = vrot.slane %v900_v44, 1  ;;  %v899_v1 = vrot.slane %v897_v42, 7 }
 0x1d2   : > { %v966_v13 = vrot.slane %v893_v52, 1 }
 0x1d3   : > { %v969_v17 = vor.u32 %v968_v60, %v897_v42  ;;  %v902_v18 = vor.u32 %v900_v44, %v899_v1  ;;  %v5177_v44 = vmov 0   ;;  %v853_v60 = vor.u32 %v851_v53, %v850_v39  ;;  %v4910_v39 = vld [vmem:[#allocation7 + $0xb0] sm:$0xff]  }
 0x1d4   : > { %v967_v12 = vor.u32 %v966_v13, %v890_v8  ;;  %v857_v1 = vrot.slane %v855_v58, 7  ;;  %v864_v13 = vrot.slane %v862_v62, 7  ;;  %v6462_v62 = vshrl.u32 %v5671_v16, 16 }
 0x1d5   : > { %v5786_v43 = vsel %vm5512_vm4, 0, %v902_v18  ;;  %v5802_v42 = vsel %vm5517_vm5, %v969_v17, 0  ;;  %v5811_v7 = vsel %vm5512_vm4, 0, %v853_v60  ;;  %v4899_v17 = vld [vmem:[#allocation7 + $0x98] sm:$0xff]  }
 0x1d6   : > { %v5794_v57 = vsel %vm5517_vm5, %v967_v12, 0  ;;  %v860_v53 = vor.u32 %v858_v51, %v857_v1  ;;  %v4908_v51 = vld [vmem:[#allocation7 + $0xa0] sm:$0xff]   ;;  %v871_v18 = vrot.slane %v6462_v62, 7  ;;  %v4909_v12 = vld [vmem:[#allocation7 + $0xa8] sm:$0xff]   ;;  %v878_v1 = vrot.slane %v876_v14, 7 }
 0x1d7   : > { %1335 = vmatmul.mubr.bf16.gmra.mrb[28].mxu1 %v5790_v55  ;;  %4344 = vmatprep.mubr.bf16.mxu0 %v5794_v57 }
 0x1d8   : > { %1342 = vmatprep.mubr.bf16.mxu1 %v5631_v33  ;;  %4345 = vmatmul.mubr.bf16.gmra.mrb[60].mxu0 %v5802_v42  ;;  %v5824_v58 = vsel %vm5512_vm4, 0, %v860_v53  ;;  %v881_v53 = vor.u32 %v879_v10, %v878_v1  ;;  %v6464_v10 = vshll.u32 %v5712_v21, 16 }
 0x1d9   : > { %1744 = vmatprep.mubr.bf16.mxu0 %v5177_v44 }
 0x1da   : > { %v5862_v14 = vsel %vm5512_vm4, 0, %v881_v53 }
 0x1df   : > { %1343 = vmatmul.mubr.bf16.gmra.mrb[32].mxu1 %v5811_v7 }
 0x1e0   : > { %1350 = vmatprep.mubr.bf16.mxu1 %v5629_v38  ;;  %1745 = vmatmul.mubr.bf16.vlgmr.msra.gmra.mrb[64].mxu0 %v5177_v44 }
 0x1e1   : > { %4349 = vmatpush3.bf16.msra.mxu0 %v5665_v9  ;;  %1752 = vmatprep.mubr.bf16.mxu0 %v5499_v0  ;;  %v867_v0 = vor.u32 %v865_v20, %v864_v13  ;;  %v885_v13 = vrot.slane %v883_v3, 7  ;;  %v892_v3 = vrot.slane %v890_v8, 7 }
 0x1e2   : > { %4350 = vmatprep.subr.bf16.mxu0 %v4893_v19 }
 0x1e3   : > { %v5836_v9 = vsel %vm5512_vm4, 0, %v867_v0 }
 0x1e5   : > { %4351 = vmatpush3.bf16.msra.mxu0 %v4893_v19  ;;  %v4911_v19 = vld [vmem:[#allocation7 + $0xb8] sm:$0xff]  }
 0x1e6   : > { %4352 = vmatprep.subr.bf16.mxu0 %v4896_v6 }
 0x1e7   : > { %1351 = vmatmul.mubr.bf16.gmra.mrb[36].mxu1 %v5824_v58 }
 0x1e8   : > { %1358 = vmatprep.mubr.bf16.mxu1 %v5673_v23  ;;  %1753 = vmatmul.mubr.bf16.gmra.mrb[68].mxu0 %v5527_v30  ;;  %v6463_v30 = vshll.u32 %v5671_v16, 16 }
 0x1e9   : > { %1760 = vmatprep.mubr.bf16.mxu0 %v5497_v63  ;;  %4353 = vmatpush3.bf16.msra.mxu0 %v4896_v6  ;;  %v5858_v6 = vld [vmem:[#allocation7 + $0x200] sm:$0xff]  }
 0x1ea   : > { %4354 = vmatprep.subr.bf16.mxu0 %v4899_v17  ;;  %v874_v20 = vor.u32 %v6463_v30, %v871_v18 }
 0x1ec   : > { %v5848_v60 = vsel %vm5512_vm4, 0, %v874_v20 }
 0x1ed   : > { %4355 = vmatpush3.bf16.msra.mxu0 %v4899_v17  ;;  %v888_v17 = vor.u32 %v6464_v10, %v885_v13 }
 0x1ee   : > { %4356 = vmatprep.subr.bf16.mxu0 %v4908_v51 }
 0x1ef   : > { %1359 = vmatmul.mubr.bf16.gmra.mrb[40].mxu1 %v5836_v9  ;;  %v5875_v0 = vsel %vm5512_vm4, 0, %v888_v17 }
 0x1f0   : > { %1366 = vmatprep.mubr.bf16.mxu1 %v5671_v16  ;;  %1761 = vmatmul.mubr.bf16.gmra.mrb[72].mxu0 %v5559_v4 }
 0x1f1   : > { %1768 = vmatprep.mubr.bf16.mxu0 %v5523_v28  ;;  %4357 = vmatpush3.bf16.msra.mxu0 %v4908_v51  ;;  %v895_v51 = vor.u32 %v893_v52, %v892_v3 }
 0x1f2   : > { %4358 = vmatprep.subr.bf16.mxu0 %v4909_v12 }
 0x1f3   : > { %v5887_v62 = vsel %vm5512_vm4, 0, %v895_v51 }
 0x1f5   : > { %4359 = vmatpush3.bf16.msra.mxu0 %v4909_v12 }
 0x1f6   : > { %4360 = vmatprep.subr.bf16.mxu0 %v4910_v39 }
 0x1f7   : > { %1367 = vmatmul.mubr.bf16.gmra.mrb[44].mxu1 %v5848_v60 }
 0x1f8   : > { %1374 = vmatprep.mubr.bf16.mxu1 %v5714_v22  ;;  %1769 = vmatmul.mubr.bf16.gmra.mrb[76].mxu0 %v5595_v48 }
 0x1f9   : > { %1776 = vmatprep.mubr.bf16.mxu0 %v5521_v25  ;;  %4361 = vmatpush3.bf16.msra.mxu0 %v4910_v39 }
 0x1fa   : > { %4362 = vmatprep.subr.bf16.mxu0 %v4911_v19 }
 0x1fd   : > { %4363 = vmatpush3.bf16.msra.mxu0 %v4911_v19 }
 0x1fe   : > { %4396 = vmatprep.subr.bf16.mxu0 %v5858_v6 }
 0x1ff   : > { %1375 = vmatmul.mubr.bf16.gmra.mrb[48].mxu1 %v5862_v14 }
 0x200   : > { %1382 = vmatprep.mubr.bf16.mxu1 %v5712_v21  ;;  %1777 = vmatmul.mubr.bf16.gmra.mrb[80].mxu0 %v5635_v35 }
 0x201   : > { %1784 = vmatprep.mubr.bf16.mxu0 %v5555_v2 }
 0x207   : > { %1383 = vmatmul.mubr.bf16.gmra.mrb[52].mxu1 %v5875_v0 }
 0x208   : > { %1390 = vmatprep.mubr.bf16.mxu1 %v5754_v50  ;;  %1785 = vmatmul.mubr.bf16.gmra.mrb[84].mxu0 %v5677_v26 }
 0x209   : > { %1792 = vmatprep.mubr.bf16.mxu0 %v5553_v61 }
 0x20f   : > { %1391 = vmatmul.mubr.bf16.gmra.mrb[56].mxu1 %v5887_v62 }
 0x210   : > { %1398 = vmatprep.mubr.bf16.mxu1 %v5752_v54  ;;  %1793 = vmatmul.mubr.bf16.gmra.mrb[88].mxu0 %v5718_v24 }
 0x211   : > { %1800 = vmatprep.mubr.bf16.mxu0 %v5591_v46 }
 0x217   : > { %1399 = vmatmul.mubr.bf16.gmra.mrb[60].mxu1 %v5786_v43 }
 0x218   : > { %1801 = vmatmul.mubr.bf16.gmra.mrb[92].mxu0 %v5758_v59  ;;  %2259 = vmatprep.mubr.bf16.mxu1 %v5497_v63  ;;  %v4920_v63 = vld [vmem:[#allocation10] sm:$0xff]  }
 0x219   : > { %1808 = vmatprep.mubr.bf16.mxu0 %v5589_v41  ;;  %4444 = vmatprep.subr.bf16.mxu1 %v4920_v63 }
 0x21f   : > { %2260 = vmatmul.mubr.bf16.vlgmr.msra.gmra.mrb[64].mxu1 %v5559_v4  ;;  %v4917_v4 = vld [vmem:[#allocation7 + $0x228] sm:$0xff]  }
 0x220   : > { %1809 = vmatmul.mubr.bf16.gmra.mrb[96].mxu0 %v5790_v55  ;;  %2267 = vmatprep.mubr.bf16.mxu1 %v5523_v28  ;;  %v4922_v28 = vld [vmem:[#allocation10 + $0x10] sm:$0xff]  }
 0x221   : > { %1816 = vmatprep.mubr.bf16.mxu0 %v5631_v33  ;;  %4445 = vmatpush3.bf16.msra.mxu1 %v4920_v63 }
 0x222   : > { %4446 = vmatprep.subr.bf16.mxu1 %v4921_v15 }
 0x225   : > { %4447 = vmatpush3.bf16.msra.mxu1 %v4921_v15 }
 0x226   : > { %4448 = vmatprep.subr.bf16.mxu1 %v4922_v28 }
 0x227   : > { %2268 = vmatmul.mubr.bf16.gmra.mrb[68].mxu1 %v5595_v48  ;;  %v4918_v48 = vld [vmem:[#allocation7 + $0x230] sm:$0xff]  }
 0x228   : > { %1817 = vmatmul.mubr.bf16.gmra.mrb[100].mxu0 %v5811_v7  ;;  %2275 = vmatprep.mubr.bf16.mxu1 %v5521_v25  ;;  %v4913_v25 = vld [vmem:[#allocation7 + $0x208] sm:$0xff]  }
 0x229   : > { %1824 = vmatprep.mubr.bf16.mxu0 %v5629_v38  ;;  %4449 = vmatpush3.bf16.msra.mxu1 %v4922_v28 }
 0x22f   : > { %2276 = vmatmul.mubr.bf16.gmra.mrb[72].mxu1 %v5635_v35 }
 0x230   : > { %1825 = vmatmul.mubr.bf16.gmra.mrb[104].mxu0 %v5824_v58  ;;  %2283 = vmatprep.mubr.bf16.mxu1 %v5555_v2  ;;  %v4915_v2 = vld [vmem:[#allocation7 + $0x218] sm:$0xff]  }
 0x231   : > { %1832 = vmatprep.mubr.bf16.mxu0 %v5673_v23 }
 0x237   : > { %2284 = vmatmul.mubr.bf16.gmra.mrb[76].mxu1 %v5677_v26  ;;  %v4919_v26 = vld [vmem:[#allocation7 + $0x238] sm:$0xff]  }
 0x238   : > { %1833 = vmatmul.mubr.bf16.gmra.mrb[108].mxu0 %v5836_v9  ;;  %2291 = vmatprep.mubr.bf16.mxu1 %v5553_v61  ;;  %v4914_v61 = vld [vmem:[#allocation7 + $0x210] sm:$0xff]  }
 0x239   : > { %1840 = vmatprep.mubr.bf16.mxu0 %v5671_v16 }
 0x23f   : > { %2292 = vmatmul.mubr.bf16.gmra.mrb[80].mxu1 %v5718_v24 }
 0x240   : > { %1841 = vmatmul.mubr.bf16.gmra.mrb[112].mxu0 %v5848_v60  ;;  %2299 = vmatprep.mubr.bf16.mxu1 %v5591_v46 }
 0x241   : > { %1848 = vmatprep.mubr.bf16.mxu0 %v5714_v22 }
 0x247   : > { %2300 = vmatmul.mubr.bf16.gmra.mrb[84].mxu1 %v5758_v59 }
 0x248   : > { %1849 = vmatmul.mubr.bf16.gmra.mrb[116].mxu0 %v5862_v14  ;;  %2307 = vmatprep.mubr.bf16.mxu1 %v5589_v41  ;;  %v4923_v41 = vld [vmem:[#allocation10 + $0x18] sm:$0xff]  }
 0x249   : > { %1856 = vmatprep.mubr.bf16.mxu0 %v5712_v21  ;;  %4450 = vmatprep.subr.bf16.mxu1 %v4923_v41 }
 0x24a   : > { %4451 = vmatpush3.bf16.msra.mxu1 %v4923_v41 }
 0x24f   : > { %2308 = vmatmul.mubr.bf16.gmra.mrb[88].mxu1 %v5790_v55 }
 0x250   : > { %1857 = vmatmul.mubr.bf16.gmra.mrb[120].mxu0 %v5875_v0  ;;  %2315 = vmatprep.mubr.bf16.mxu1 %v5631_v33 }
 0x251   : > { %1864 = vmatprep.mubr.bf16.mxu0 %v5754_v50 }
 0x257   : > { %2316 = vmatmul.mubr.bf16.gmra.mrb[92].mxu1 %v5811_v7 }
 0x258   : > { %1865 = vmatmul.mubr.bf16.gmra.mrb[124].mxu0 %v5887_v62  ;;  %2323 = vmatprep.mubr.bf16.mxu1 %v5629_v38 }
 0x259   : > { %4364 = vmatprep.mubr.bf16.mxu0 %v5177_v44 }
 0x25f   : > { %2324 = vmatmul.mubr.bf16.gmra.mrb[96].mxu1 %v5824_v58 }
 0x260   : > { %4365 = vmatmul.mubr.bf16.vlgmr.msra.gmra.mrb[32].mxu0 %v5531_v31  ;;  %2331 = vmatprep.mubr.bf16.mxu1 %v5673_v23  ;;  %v4916_v31 = vld [vmem:[#allocation7 + $0x220] sm:$0xff]  }
 0x261   : > { %4397 = vmatpush3.bf16.msra.mxu0 %v5858_v6  ;;  %4368 = vmatprep.mubr.bf16.mxu0 %v5538_v37 }
 0x262   : > { %4398 = vmatprep.subr.bf16.mxu0 %v4913_v25 }
 0x265   : > { %4399 = vmatpush3.bf16.msra.mxu0 %v4913_v25  ;;  %v4926_v25 = vld [vmem:[#allocation10 + $0x30] sm:$0xff]  }
 0x266   : > { %4400 = vmatprep.subr.bf16.mxu0 %v4914_v61 }
 0x267   : > { %2332 = vmatmul.mubr.bf16.gmra.mrb[100].mxu1 %v5836_v9 }
 0x268   : > { %4369 = vmatmul.mubr.bf16.gmra.mrb[36].mxu0 %v5563_v5  ;;  %2339 = vmatprep.mubr.bf16.mxu1 %v5671_v16 }
 0x269   : > { %4372 = vmatprep.mubr.bf16.mxu0 %v5570_v11  ;;  %4401 = vmatpush3.bf16.msra.mxu0 %v4914_v61 }
 0x26a   : > { %4402 = vmatprep.subr.bf16.mxu0 %v4915_v2 }
 0x26d   : > { %4403 = vmatpush3.bf16.msra.mxu0 %v4915_v2 }
 0x26e   : > { %4404 = vmatprep.subr.bf16.mxu0 %v4916_v31 }
 0x26f   : > { %2340 = vmatmul.mubr.bf16.gmra.mrb[104].mxu1 %v5848_v60 }
 0x270   : > { %4373 = vmatmul.mubr.bf16.gmra.mrb[40].mxu0 %v5599_v49  ;;  %2347 = vmatprep.mubr.bf16.mxu1 %v5714_v22 }
 0x271   : > { %4376 = vmatprep.mubr.bf16.mxu0 %v5608_v56  ;;  %4405 = vmatpush3.bf16.msra.mxu0 %v4916_v31 }
 0x272   : > { %v3812_v46 = vpop.f32.mrb[0].mxu1  ;;  %4406 = vmatprep.subr.bf16.mxu0 %v4917_v4 }
 0x273   : > { %v3813_v38 = vpop.f32.mrb[1].mxu1 }
 0x274   : > { %v5942_v33 = vadd.f32 %v3813_v38, %v3812_v46  ;;  %v3815_v35 = vpop.f32.mrb[2].mxu1 }
 0x275   : > { %v3816_v16 = vpop.f32.mrb[3].mxu1  ;;  %4407 = vmatpush3.bf16.msra.mxu0 %v4917_v4 }
 0x276   : > { %v5944_v23 = vadd.f32 %v3816_v16, %v3815_v35  ;;  %4408 = vmatprep.subr.bf16.mxu0 %v4918_v48  ;;  %v4927_v35 = vld [vmem:[#allocation10 + $0x38] sm:$0xff]  }
 0x277   : > { %2348 = vmatmul.mubr.bf16.gmra.mrb[108].mxu1 %v5862_v14 }
 0x278   : > { %4377 = vmatmul.mubr.bf16.gmra.mrb[44].mxu0 %v5639_v36  ;;  %2355 = vmatprep.mubr.bf16.mxu1 %v5712_v21  ;;  %v4924_v21 = vld [vmem:[#allocation10 + $0x20] sm:$0xff]  }
 0x279   : > { %4380 = vmatprep.mubr.bf16.mxu0 %v5648_v47  ;;  %4409 = vmatpush3.bf16.msra.mxu0 %v4918_v48 }
 0x27a   : > { %v3818_v22 = vpop.f32.mrb[4].mxu1  ;;  %4410 = vmatprep.subr.bf16.mxu0 %v4919_v26  ;;  %4452 = vmatprep.subr.bf16.mxu1 %v4924_v21 }
 0x27b   : > { %v3819_v24 = vpop.f32.mrb[5].mxu1  ;;  %4453 = vmatpush3.bf16.msra.mxu1 %v4924_v21 }
 0x27c   : > { %v5950_v59 = vadd.f32 %v3819_v24, %v3818_v22  ;;  %v3821_v52 = vpop.f32.mrb[6].mxu1 }
 0x27d   : > { %v3822_v8 = vpop.f32.mrb[7].mxu1  ;;  %4411 = vmatpush3.bf16.msra.mxu0 %v4919_v26 }
 0x27e   : > { %v5952_v55 = vadd.f32 %v3822_v8, %v3821_v52 }
 0x27f   : > { %2356 = vmatmul.mubr.bf16.gmra.mrb[112].mxu1 %v5875_v0 }
 0x280   : > { %4381 = vmatmul.mubr.bf16.gmra.mrb[48].mxu0 %v5681_v29  ;;  %2363 = vmatprep.mubr.bf16.mxu1 %v5754_v50 }
 0x281   : > { %4384 = vmatprep.mubr.bf16.mxu0 %v5691_v40 }
 0x282   : > { %v3824_v7 = vpop.f32.mrb[8].mxu1 }
 0x283   : > { %v3825_v58 = vpop.f32.mrb[9].mxu1 }
 0x284   : > { %v5958_v9 = vadd.f32 %v3825_v58, %v3824_v7  ;;  %v3827_v18 = vpop.f32.mrb[10].mxu1 }
 0x285   : > { %v3828_v12 = vpop.f32.mrb[11].mxu1 }
 0x286   : > { %v5960_v30 = vadd.f32 %v3828_v12, %v3827_v18  ;;  %v4937_v18 = vld [vmem:[%s5458_s27 + $0x8] sm:$0xff]   ;;  %v4938_v12 = vld [vmem:[%s5458_s27 + $0x10] sm:$0xff]  }
 0x287   : > { %2364 = vmatmul.mubr.bf16.gmra.mrb[116].mxu1 %v5887_v62 }
 0x288   : > { %4385 = vmatmul.mubr.bf16.gmra.mrb[52].mxu0 %v5722_v32  ;;  %2371 = vmatprep.mubr.bf16.mxu1 %v5752_v54  ;;  %v4925_v54 = vld [vmem:[#allocation10 + $0x28] sm:$0xff]  }
 0x289   : > { %4388 = vmatprep.mubr.bf16.mxu0 %v5731_v45  ;;  %4454 = vmatprep.subr.bf16.mxu1 %v4925_v54 }
 0x28a   : > { %v3830_v50 = vpop.f32.mrb[12].mxu1  ;;  %4455 = vmatpush3.bf16.msra.mxu1 %v4925_v54 }
 0x28b   : > { %v3831_v20 = vpop.f32.mrb[13].mxu1  ;;  %4456 = vmatprep.subr.bf16.mxu1 %v4926_v25 }
 0x28c   : > { %v5966_v39 = vadd.f32 %v3831_v20, %v3830_v50  ;;  %v3833_v60 = vpop.f32.mrb[14].mxu1 }
 0x28d   : > { %v3834_v1 = vpop.f32.mrb[15].mxu1 }
 0x28e   : > { %v5968_v19 = vadd.f32 %v3834_v1, %v3833_v60  ;;  %4457 = vmatpush3.bf16.msra.mxu1 %v4926_v25  ;;  %v4940_v25 = vld [vmem:[%s5458_s27 + $0x20] sm:$0xff]  }
 0x28f   : > { %2372 = vmatmul.mubr.bf16.gmra.mrb[120].mxu1 %v5786_v43  ;;  %v4936_v43 = vld [vmem:[%s5458_s27] sm:$0xff]   ;;  %4458 = vmatprep.subr.bf16.mxu1 %v4927_v35 }
 0x290   : > { %4389 = vmatmul.mubr.bf16.gmra.mrb[56].mxu0 %v5762_v34  ;;  %2379 = vmatprep.mubr.bf16.mxu1 %v5177_v44 }
 0x291   : > { %4392 = vmatprep.mubr.bf16.mxu0 %v5770_v27 }
 0x292   : > { %v3836_v53 = vpop.f32.mrb[16].mxu1  ;;  %4459 = vmatpush3.bf16.msra.mxu1 %v4927_v35 }
 0x293   : > { %v3837_v6 = vpop.f32.mrb[17].mxu1 }
 0x294   : > { %v5974_v14 = vadd.f32 %v3837_v6, %v3836_v53  ;;  %v3839_v13 = vpop.f32.mrb[18].mxu1 }
 0x295   : > { %v3840_v10 = vpop.f32.mrb[19].mxu1 }
 0x296   : > { %v5976_v17 = vadd.f32 %v3840_v10, %v3839_v13 }
 0x297   : > { %2380 = vmatmul.mubr.bf16.gmra.mrb[124].mxu1 %v5177_v44 }
 0x298   : > { %4393 = vmatmul.mubr.bf16.gmra.mrb[60].mxu0 %v5794_v57  ;;  %4460 = vmatprep.mubr.bf16.mxu1 %v4936_v43 }
 0x299   : > { %4412 = vmatprep.mubr.bf16.mxu0 %v5538_v37 }
 0x29a   : > { %v3842_v0 = vpop.f32.mrb[20].mxu1 }
 0x29b   : > { %v3843_v3 = vpop.f32.mrb[21].mxu1 }
 0x29c   : > { %v5982_v51 = vadd.f32 %v3843_v3, %v3842_v0  ;;  %v3845_v62 = vpop.f32.mrb[22].mxu1  ;;  %v4928_v0 = vld [vmem:[#allocation8] sm:$0xff]  }
 0x29d   : > { %v3846_v63 = vpop.f32.mrb[23].mxu1  ;;  %4492 = vmatprep.subr.bf16.mxu1 %v4928_v0 }
 0x29e   : > { %v5984_v15 = vadd.f32 %v3846_v63, %v3845_v62 }
 0x29f   : > { %4461 = vmatmul.mubr.bf16.vlgmr.msra.gmra.mrb[128].mxu1 %v4937_v18 }
 0x2a0   : > { %4413 = vmatmul.mubr.bf16.vlgmr.msra.gmra.mrb[32].mxu0 %v5563_v5  ;;  %4464 = vmatprep.mubr.bf16.mxu1 %v4938_v12  ;;  %v4930_v12 = vld [vmem:[#allocation8 + $0x10] sm:$0xff]  }
 0x2a1   : > { %4416 = vmatprep.mubr.bf16.mxu0 %v5570_v11  ;;  %4493 = vmatpush3.bf16.msra.mxu1 %v4928_v0 }
 0x2a2   : > { %v3848_v28 = vpop.f32.mrb[24].mxu1 }
 0x2a3   : > { %v3849_v61 = vpop.f32.mrb[25].mxu1 }
 0x2a4   : > { %v5988_v2 = vadd.f32 %v3849_v61, %v3848_v28  ;;  %v3851_v31 = vpop.f32.mrb[26].mxu1 }
 0x2a5   : > { %v3852_v37 = vpop.f32.mrb[27].mxu1 }
 0x2a6   : > { %v5990_v4 = vadd.f32 %v3852_v37, %v3851_v31 }
 0x2a8   : > { %4417 = vmatmul.mubr.bf16.gmra.mrb[36].mxu0 %v5599_v49 }
 0x2a9   : > { %4420 = vmatprep.mubr.bf16.mxu0 %v5608_v56 }
 0x2aa   : > { %v3854_v41 = vpop.f32.mrb[28].mxu1 }
 0x2ab   : > { %v3855_v46 = vpop.f32.mrb[29].mxu1 }
 0x2ac   : > { %v5994_v5 = vadd.f32 %v3855_v46, %v3854_v41  ;;  %v3857_v11 = vpop.f32.mrb[30].mxu1 }
 0x2ad   : > { %v3858_v48 = vpop.f32.mrb[31].mxu1 }
 0x2ae   : > { %v5996_v38 = vadd.f32 %v3858_v48, %v3857_v11  ;;  %v4929_v48 = vld [vmem:[#allocation8 + $0x8] sm:$0xff]  }
 0x2af   : > { %4494 = vmatprep.subr.bf16.mxu1 %v4929_v48 }
 0x2b0   : > { %4421 = vmatmul.mubr.bf16.gmra.mrb[40].mxu0 %v5639_v36  ;;  %4495 = vmatpush3.bf16.msra.mxu1 %v4929_v48 }
 0x2b1   : > { %4424 = vmatprep.mubr.bf16.mxu0 %v5648_v47  ;;  %4496 = vmatprep.subr.bf16.mxu1 %v4930_v12 }
 0x2b2   : > { %v3860_v16 = vpop.f32.mrb[32].mxu1 }
 0x2b3   : > { %v3861_v26 = vpop.f32.mrb[33].mxu1  ;;  %v3948_v22 = vpop.f32.mrb[64].mxu0 }
 0x2b4   : > { %v6000_v49 = vadd.f32 %v3861_v26, %v3860_v16  ;;  %v3863_v56 = vpop.f32.mrb[34].mxu1  ;;  %v3949_v24 = vpop.f32.mrb[65].mxu0  ;;  %v4941_v16 = vld [vmem:[%s5458_s27 + $0x28] sm:$0xff]   ;;  %4497 = vmatpush3.bf16.msra.mxu1 %v4930_v12 }
 0x2b5   : > { %v3950_v52 = vadd.f32 %v3949_v24, %v3948_v22  ;;  %v3864_v8 = vpop.f32.mrb[35].mxu1  ;;  %v3951_v21 = vpop.f32.mrb[66].mxu0 }
 0x2b6   : > { %v6002_v7 = vadd.f32 %v3864_v8, %v3863_v56  ;;  %v3952_v36 = vpop.f32.mrb[67].mxu0  ;;  %v4942_v56 = vld [vmem:[%s5458_s27 + $0x30] sm:$0xff]  }
 0x2b7   : > { %v6005_v47 = vadd.f32 %v3950_v52, %v5942_v33  ;;  %v3953_v58 = vadd.f32 %v3952_v36, %v3951_v21 }
 0x2b8   : > { %4425 = vmatmul.mubr.bf16.gmra.mrb[44].mxu0 %v5681_v29 }
 0x2b9   : > { %v6011_v50 = vadd.f32 %v3953_v58, %v5944_v23  ;;  %4428 = vmatprep.mubr.bf16.mxu0 %v5691_v40  ;;  %v4939_v40 = vld [vmem:[%s5458_s27 + $0x18] sm:$0xff]  }
 0x2ba   : > { %v3866_v20 = vpop.f32.mrb[36].mxu1  ;;  %4465 = vmatmul.mubr.bf16.gmra.mrb[132].mxu1 %v4939_v40 }
 0x2bb   : > { %v3867_v60 = vpop.f32.mrb[37].mxu1  ;;  %v3954_v1 = vpop.f32.mrb[68].mxu0  ;;  %4468 = vmatprep.mubr.bf16.mxu1 %v4940_v25 }
 0x2bc   : > { %v6014_v54 = vadd.f32 %v3867_v60, %v3866_v20  ;;  %v3869_v33 = vpop.f32.mrb[38].mxu1  ;;  %v3955_v53 = vpop.f32.mrb[69].mxu0  ;;  %v4943_v60 = vld [vmem:[%s5458_s27 + $0x38] sm:$0xff]  }
 0x2bd   : > { %v3956_v6 = vadd.f32 %v3955_v53, %v3954_v1  ;;  %v3870_v13 = vpop.f32.mrb[39].mxu1  ;;  %v3957_v10 = vpop.f32.mrb[70].mxu0  ;;  %v4944_v53 = vld [vmem:[%s5458_s27 + $0x40] sm:$0xff]  }
 0x2be   : > { %v6016_v29 = vadd.f32 %v3870_v13, %v3869_v33  ;;  %v3958_v43 = vpop.f32.mrb[71].mxu0 }
 0x2bf   : > { %v6019_v23 = vadd.f32 %v3956_v6, %v5950_v59  ;;  %v3959_v3 = vadd.f32 %v3958_v43, %v3957_v10 }
 0x2c0   : > { %4429 = vmatmul.mubr.bf16.gmra.mrb[48].mxu0 %v5722_v32 }
 0x2c1   : > { %v6024_v62 = vadd.f32 %v3959_v3, %v5952_v55  ;;  %4432 = vmatprep.mubr.bf16.mxu0 %v5731_v45 }
 0x2c2   : > { %v3872_v63 = vpop.f32.mrb[40].mxu1  ;;  %4469 = vmatmul.mubr.bf16.gmra.mrb[136].mxu1 %v4941_v16 }
 0x2c3   : > { %v3873_v28 = vpop.f32.mrb[41].mxu1  ;;  %v3960_v61 = vpop.f32.mrb[72].mxu0  ;;  %4472 = vmatprep.mubr.bf16.mxu1 %v4942_v56 }
 0x2c4   : > { %v6028_v59 = vadd.f32 %v3873_v28, %v3872_v63  ;;  %v3875_v31 = vpop.f32.mrb[42].mxu1  ;;  %v3961_v37 = vpop.f32.mrb[73].mxu0  ;;  %v4931_v63 = vld [vmem:[#allocation8 + $0x18] sm:$0xff]   ;;  %v4945_v28 = vld [vmem:[%s5458_s27 + $0x48] sm:$0xff]  }
 0x2c5   : > { %v3962_v41 = vadd.f32 %v3961_v37, %v3960_v61  ;;  %v3876_v32 = vpop.f32.mrb[43].mxu1  ;;  %v3963_v46 = vpop.f32.mrb[74].mxu0  ;;  %4498 = vmatprep.subr.bf16.mxu1 %v4931_v63 }
 0x2c6   : > { %v6030_v11 = vadd.f32 %v3876_v32, %v3875_v31  ;;  %v3964_v55 = vpop.f32.mrb[75].mxu0  ;;  %4499 = vmatpush3.bf16.msra.mxu1 %v4931_v63  ;;  %v4946_v31 = vld [vmem:[%s5458_s27 + $0x50] sm:$0xff]  }
 0x2c7   : > { %v6033_v45 = vadd.f32 %v3962_v41, %v5958_v9  ;;  %v3965_v35 = vadd.f32 %v3964_v55, %v3963_v46 }
 0x2c8   : > { %4433 = vmatmul.mubr.bf16.gmra.mrb[52].mxu0 %v5762_v34 }
 0x2c9   : > { %v6038_v26 = vadd.f32 %v3965_v35, %v5960_v30  ;;  %4436 = vmatprep.mubr.bf16.mxu0 %v5770_v27 }
 0x2ca   : > { %v3878_v22 = vpop.f32.mrb[44].mxu1  ;;  %4473 = vmatmul.mubr.bf16.gmra.mrb[140].mxu1 %v4943_v60 }
 0x2cb   : > { %v3879_v24 = vpop.f32.mrb[45].mxu1  ;;  %v3966_v52 = vpop.f32.mrb[76].mxu0  ;;  %4476 = vmatprep.mubr.bf16.mxu1 %v4944_v53 }
 0x2cc   : > { %v6042_v9 = vadd.f32 %v3879_v24, %v3878_v22  ;;  %v3881_v8 = vpop.f32.mrb[46].mxu1  ;;  %v3967_v21 = vpop.f32.mrb[77].mxu0 }
 0x2cd   : > { %v3968_v36 = vadd.f32 %v3967_v21, %v3966_v52  ;;  %v3882_v34 = vpop.f32.mrb[47].mxu1  ;;  %v3969_v58 = vpop.f32.mrb[78].mxu0  ;;  %v4947_v52 = vld [vmem:[%s5458_s27 + $0x58] sm:$0xff]  }
 0x2ce   : > { %v6044_v18 = vadd.f32 %v3882_v34, %v3881_v8  ;;  %v3970_v30 = vpop.f32.mrb[79].mxu0  ;;  %v4948_v8 = vld [vmem:[%s5458_s27 + $0x60] sm:$0xff]  }
 0x2cf   : > { %v6047_v27 = vadd.f32 %v3968_v36, %v5966_v39  ;;  %v3971_v20 = vadd.f32 %v3970_v30, %v3969_v58 }
 0x2d0   : > { %4437 = vmatmul.mubr.bf16.gmra.mrb[56].mxu0 %v5794_v57 }
 0x2d1   : > { %v6052_v1 = vadd.f32 %v3971_v20, %v5968_v19  ;;  %4440 = vmatprep.mubr.bf16.mxu0 %v5802_v42 }
 0x2d2   : > { %v3884_v33 = vpop.f32.mrb[48].mxu1  ;;  %4477 = vmatmul.mubr.bf16.gmra.mrb[144].mxu1 %v4945_v28 }
 0x2d3   : > { %v3885_v6 = vpop.f32.mrb[49].mxu1  ;;  %v3972_v13 = vpop.f32.mrb[80].mxu0  ;;  %4480 = vmatprep.mubr.bf16.mxu1 %v4946_v31 }
 0x2d4   : > { %v6056_v39 = vadd.f32 %v3885_v6, %v3884_v33  ;;  %v3887_v10 = vpop.f32.mrb[50].mxu1  ;;  %v3973_v43 = vpop.f32.mrb[81].mxu0 }
 0x2d5   : > { %v3974_v0 = vadd.f32 %v3973_v43, %v3972_v13  ;;  %v3888_v57 = vpop.f32.mrb[51].mxu1  ;;  %v3975_v3 = vpop.f32.mrb[82].mxu0  ;;  %v4933_v13 = vld [vmem:[#allocation8 + $0x28] sm:$0xff]  }
 0x2d6   : > { %v6058_v40 = vadd.f32 %v3888_v57, %v3887_v10  ;;  %v3976_v19 = vpop.f32.mrb[83].mxu0  ;;  %v4949_v43 = vld [vmem:[%s5458_s27 + $0x68] sm:$0xff]  }
 0x2d7   : > { %v6061_v42 = vadd.f32 %v3974_v0, %v5974_v14  ;;  %v3977_v25 = vadd.f32 %v3976_v19, %v3975_v3  ;;  %v4950_v0 = vld [vmem:[%s5458_s27 + $0x70] sm:$0xff]  }
 0x2d8   : > { %4441 = vmatmul.mubr.bf16.gmra.mrb[60].mxu0 %v5177_v44 }
 0x2d9   : > { %v6066_v61 = vadd.f32 %v3977_v25, %v5976_v17  ;;  %v4932_v17 = vld [vmem:[#allocation8 + $0x20] sm:$0xff]  }
 0x2da   : > { %v3890_v37 = vpop.f32.mrb[52].mxu1  ;;  %4481 = vmatmul.mubr.bf16.gmra.mrb[148].mxu1 %v4947_v52  ;;  %4500 = vmatprep.subr.bf16.mxu1 %v4932_v17 }
 0x2db   : > { %v3891_v41 = vpop.f32.mrb[53].mxu1  ;;  %v3978_v32 = vpop.f32.mrb[84].mxu0  ;;  %4484 = vmatprep.mubr.bf16.mxu1 %v4948_v8  ;;  %4501 = vmatpush3.bf16.msra.mxu1 %v4932_v17 }
 0x2dc   : > { %v6069_v46 = vadd.f32 %v3891_v41, %v3890_v37  ;;  %v3893_v14 = vpop.f32.mrb[54].mxu1  ;;  %v3979_v55 = vpop.f32.mrb[85].mxu0  ;;  %4502 = vmatprep.subr.bf16.mxu1 %v4933_v13 }
 0x2dd   : > { %v3980_v48 = vadd.f32 %v3979_v55, %v3978_v32  ;;  %v3894_v35 = vpop.f32.mrb[55].mxu1  ;;  %v3981_v16 = vpop.f32.mrb[86].mxu0  ;;  %v4934_v55 = vld [vmem:[#allocation8 + $0x30] sm:$0xff]  }
 0x2de   : > { %v6071_v44 = vadd.f32 %v3894_v35, %v3893_v14  ;;  %v3982_v22 = vpop.f32.mrb[87].mxu0  ;;  %v4951_v35 = vld [vmem:[%s5458_s27 + $0x78] sm:$0xff]   ;;  %s5178_s27 = smov [#allocation11]  }
 0x2df   : > { %v6074_v56 = vadd.f32 %v3980_v48, %v5982_v51  ;;  %v3983_v24 = vadd.f32 %v3982_v22, %v3981_v16  ;;  %4503 = vmatpush3.bf16.msra.mxu1 %v4933_v13  ;;  %s5098_s11 = sshll.u32 %s5178_s27, 4  ;;  %s5099_s11 = int_to_ptr.vmem [resolvable:$false] %s5098_s11 }
 0x2e0   : > { %4504 = vmatprep.subr.bf16.mxu1 %v4934_v55  ;;  %s5100_s13 = scalar_lea.vmem %s5099_s11, 4096  ;;  %p5101_p12 = scmp.lt.s32.totalorder %s6379_s10, %s5099_s11 }
 0x2e1   : > { %v6079_v21 = vadd.f32 %v3983_v24, %v5984_v15  ;;  %p5102_p1 = scmp.lt.s32.totalorder %s5100_s13, %s5094_s20 }
 0x2e2   : > { %v3896_v36 = vpop.f32.mrb[56].mxu1  ;;  %4485 = vmatmul.mubr.bf16.gmra.mrb[152].mxu1 %v4949_v43 }
 0x2e3   : > { %v3897_v34 = vpop.f32.mrb[57].mxu1  ;;  %v3984_v58 = vpop.f32.mrb[88].mxu0  ;;  %4488 = vmatprep.mubr.bf16.mxu1 %v4950_v0  ;;  %4505 = vmatpush3.bf16.msra.mxu1 %v4934_v55  ;;  %p5103_p2 = por %p5102_p1, %p5101_p12 }
 0x2e4   : > { %v6081_v30 = vadd.f32 %v3897_v34, %v3896_v36  ;;  %v3899_v12 = vpop.f32.mrb[58].mxu1  ;;  %v3985_v51 = vpop.f32.mrb[89].mxu0 }
 0x2e5   : > { %v3986_v20 = vadd.f32 %v3985_v51, %v3984_v58  ;;  %v3900_v60 = vpop.f32.mrb[59].mxu1  ;;  %v3987_v33 = vpop.f32.mrb[90].mxu0  ;;  %p5104_p13 = pnand %p5103_p2, %p5097_p7 }
 0x2e6   : > { %v6083_v53 = vadd.f32 %v3900_v60, %v3899_v12  ;;  %v3988_v6 = vpop.f32.mrb[91].mxu0 }
 0x2e7   : > { %v6086_v15 = vadd.f32 %v3986_v20, %v5988_v2  ;;  %v3989_v10 = vadd.f32 %v3988_v6, %v3987_v33 }
 0x2e9   : > { %v6091_v57 = vadd.f32 %v3989_v10, %v5990_v4  ;;  %v4935_v10 = vld [vmem:[#allocation8 + $0x38] sm:$0xff]  }
 0x2ea   : > { %v3902_v3 = vpop.f32.mrb[60].mxu1  ;;  %4489 = vmatmul.mubr.bf16.gmra.mrb[156].mxu1 %v4951_v35  ;;  %4506 = vmatprep.subr.bf16.mxu1 %v4935_v10 }
 0x2eb   : > { %v3903_v19 = vpop.f32.mrb[61].mxu1  ;;  %v3990_v63 = vpop.f32.mrb[92].mxu0  ;;  %4507 = vmatpush3.bf16.msra.mxu1 %v4935_v10 }
 0x2ec   : > { %v6093_v25 = vadd.f32 %v3903_v19, %v3902_v3  ;;  %v3905_v28 = vpop.f32.mrb[62].mxu1  ;;  %v3991_v31 = vpop.f32.mrb[93].mxu0 }
 0x2ed   : > { %v3992_v2 = vadd.f32 %v3991_v31, %v3990_v63  ;;  %v3906_v37 = vpop.f32.mrb[63].mxu1  ;;  %v3993_v41 = vpop.f32.mrb[94].mxu0 }
 0x2ee   : > { %v6095_v32 = vadd.f32 %v3906_v37, %v3905_v28  ;;  %v3994_v14 = vpop.f32.mrb[95].mxu0 }
 0x2ef   : > { %v6098_v48 = vadd.f32 %v3992_v2, %v5994_v5  ;;  %v3995_v4 = vadd.f32 %v3994_v14, %v3993_v41 }
 0x2f1   : > { %v6102_v16 = vadd.f32 %v3995_v4, %v5996_v38 }
 0x2f2   : > { %v4084_v22 = vpop.f32.mrb[64].mxu1 }
 0x2f3   : > { %v3996_v17 = vpop.f32.mrb[96].mxu0  ;;  %v4085_v24 = vpop.f32.mrb[65].mxu1 }
 0x2f4   : > { %v4086_v52 = vadd.f32 %v4085_v24, %v4084_v22  ;;  %v3997_v8 = vpop.f32.mrb[97].mxu0  ;;  %v4087_v36 = vpop.f32.mrb[66].mxu1 }
 0x2f5   : > { %v3998_v34 = vadd.f32 %v3997_v8, %v3996_v17  ;;  %v3999_v58 = vpop.f32.mrb[98].mxu0  ;;  %v4088_v12 = vpop.f32.mrb[67].mxu1 }
 0x2f6   : > { %v4089_v51 = vadd.f32 %v4088_v12, %v4087_v36  ;;  %v4000_v5 = vpop.f32.mrb[99].mxu0  ;;  %v6105_v20 = vadd.f32 %v6005_v47, %v4086_v52 }
 0x2f7   : > { %v6108_v60 = vadd.f32 %v3998_v34, %v6000_v49  ;;  %v4001_v38 = vadd.f32 %v4000_v5, %v3999_v58 }
 0x2f8   : > { %v6111_v33 = vadd.f32 %v6011_v50, %v4089_v51 }
 0x2f9   : > { %v6114_v6 = vadd.f32 %v4001_v38, %v6002_v7 }
 0x2fa   : > { %v4090_v13 = vpop.f32.mrb[68].mxu1 }
 0x2fb   : > { %v4002_v43 = vpop.f32.mrb[100].mxu0  ;;  %v4091_v0 = vpop.f32.mrb[69].mxu1 }
 0x2fc   : > { %v4092_v3 = vadd.f32 %v4091_v0, %v4090_v13  ;;  %v4003_v19 = vpop.f32.mrb[101].mxu0  ;;  %v4093_v63 = vpop.f32.mrb[70].mxu1 }
 0x2fd   : > { %v4004_v47 = vadd.f32 %v4003_v19, %v4002_v43  ;;  %v4005_v28 = vpop.f32.mrb[102].mxu0  ;;  %v4094_v31 = vpop.f32.mrb[71].mxu1 }
 0x2fe   : > { %v4095_v49 = vadd.f32 %v4094_v31, %v4093_v63  ;;  %v4006_v2 = vpop.f32.mrb[103].mxu0  ;;  %v6117_v50 = vadd.f32 %v6019_v23, %v4092_v3 }
 0x2ff   : > { %v6120_v7 = vadd.f32 %v4004_v47, %v6014_v54  ;;  %v4007_v37 = vadd.f32 %v4006_v2, %v4005_v28 }
 0x300   : > { %v6123_v41 = vadd.f32 %v6024_v62, %v4095_v49 }
 0x301   : > { %v6126_v14 = vadd.f32 %v4007_v37, %v6016_v29 }
 0x302   : > { %v4096_v55 = vpop.f32.mrb[72].mxu1 }
 0x303   : > { %v4008_v4 = vpop.f32.mrb[104].mxu0  ;;  %v4097_v35 = vpop.f32.mrb[73].mxu1 }
 0x304   : > { %v4098_v22 = vadd.f32 %v4097_v35, %v4096_v55  ;;  %v4009_v17 = vpop.f32.mrb[105].mxu0  ;;  %v4099_v24 = vpop.f32.mrb[74].mxu1 }
 0x305   : > { %v4010_v52 = vadd.f32 %v4009_v17, %v4008_v4  ;;  %v4011_v8 = vpop.f32.mrb[106].mxu0  ;;  %v4100_v23 = vpop.f32.mrb[75].mxu1 }
 0x306   : > { %v4101_v36 = vadd.f32 %v4100_v23, %v4099_v24  ;;  %v4012_v34 = vpop.f32.mrb[107].mxu0  ;;  %v6129_v54 = vadd.f32 %v6033_v45, %v4098_v22 }
 0x307   : > { %v6132_v62 = vadd.f32 %v4010_v52, %v6028_v59  ;;  %v4013_v58 = vadd.f32 %v4012_v34, %v4011_v8 }
 0x308   : > { %v6135_v29 = vadd.f32 %v6038_v26, %v4101_v36 }
 0x309   : > { %v6138_v12 = vadd.f32 %v4013_v58, %v6030_v11 }
 0x30a   : > { %v4102_v51 = vpop.f32.mrb[76].mxu1 }
 0x30b   : > { %v4014_v5 = vpop.f32.mrb[108].mxu0  ;;  %v4103_v38 = vpop.f32.mrb[77].mxu1 }
 0x30c   : > { %v4104_v13 = vadd.f32 %v4103_v38, %v4102_v51  ;;  %v4015_v10 = vpop.f32.mrb[109].mxu0  ;;  %v4105_v43 = vpop.f32.mrb[78].mxu1 }
 0x30d   : > { %v4016_v0 = vadd.f32 %v4015_v10, %v4014_v5  ;;  %v4017_v3 = vpop.f32.mrb[110].mxu0  ;;  %v4106_v45 = vpop.f32.mrb[79].mxu1 }
 0x30e   : > { %v4107_v19 = vadd.f32 %v4106_v45, %v4105_v43  ;;  %v4018_v63 = vpop.f32.mrb[111].mxu0  ;;  %v6141_v59 = vadd.f32 %v6047_v27, %v4104_v13 }
 0x30f   : > { %v6144_v26 = vadd.f32 %v4016_v0, %v6042_v9  ;;  %v4019_v47 = vadd.f32 %v4018_v63, %v4017_v3 }
 0x310   : > { %v6147_v11 = vadd.f32 %v6052_v1, %v4107_v19 }
 0x311   : > { %v6150_v28 = vadd.f32 %v4019_v47, %v6044_v18 }
 0x312   : > { %v4108_v31 = vpop.f32.mrb[80].mxu1 }
 0x313   : > { %v4020_v49 = vpop.f32.mrb[112].mxu0  ;;  %v4109_v2 = vpop.f32.mrb[81].mxu1 }
 0x314   : > { %v4110_v37 = vadd.f32 %v4109_v2, %v4108_v31  ;;  %v4021_v55 = vpop.f32.mrb[113].mxu0  ;;  %v4111_v4 = vpop.f32.mrb[82].mxu1 }
 0x315   : > { %v4022_v35 = vadd.f32 %v4021_v55, %v4020_v49  ;;  %v4023_v22 = vpop.f32.mrb[114].mxu0  ;;  %v4112_v27 = vpop.f32.mrb[83].mxu1 }
 0x316   : > { %v4113_v17 = vadd.f32 %v4112_v27, %v4111_v4  ;;  %v4024_v24 = vpop.f32.mrb[115].mxu0  ;;  %v6153_v9 = vadd.f32 %v6061_v42, %v4110_v37 }
 0x317   : > { %v6156_v1 = vadd.f32 %v4022_v35, %v6056_v39  ;;  %v4025_v52 = vadd.f32 %v4024_v24, %v4023_v22 }
 0x318   : > { %v6159_v18 = vadd.f32 %v6066_v61, %v4113_v17 }
 0x319   : > { %v6162_v8 = vadd.f32 %v4025_v52, %v6058_v40 }
 0x31a   : > { %v4114_v23 = vpop.f32.mrb[84].mxu1 }
 0x31b   : > { %v4026_v36 = vpop.f32.mrb[116].mxu0  ;;  %v4115_v34 = vpop.f32.mrb[85].mxu1 }
 0x31c   : > { %v4116_v58 = vadd.f32 %v4115_v34, %v4114_v23  ;;  %v4027_v51 = vpop.f32.mrb[117].mxu0  ;;  %v4117_v5 = vpop.f32.mrb[86].mxu1 }
 0x31d   : > { %v4028_v38 = vadd.f32 %v4027_v51, %v4026_v36  ;;  %v4029_v13 = vpop.f32.mrb[118].mxu0  ;;  %v4118_v42 = vpop.f32.mrb[87].mxu1 }
 0x31e   : > { %v4119_v10 = vadd.f32 %v4118_v42, %v4117_v5  ;;  %v4030_v43 = vpop.f32.mrb[119].mxu0  ;;  %v6165_v39 = vadd.f32 %v6074_v56, %v4116_v58 }
 0x31f   : > { %v6168_v61 = vadd.f32 %v4028_v38, %v6069_v46  ;;  %v4031_v0 = vadd.f32 %v4030_v43, %v4029_v13 }
 0x320   : > { %v6171_v40 = vadd.f32 %v6079_v21, %v4119_v10 }
 0x321   : > { %v6174_v3 = vadd.f32 %v4031_v0, %v6071_v44 }
 0x322   : > { %v4120_v45 = vpop.f32.mrb[88].mxu1 }
 0x323   : > { %v4032_v19 = vpop.f32.mrb[120].mxu0  ;;  %v4121_v63 = vpop.f32.mrb[89].mxu1 }
 0x324   : > { %v4122_v47 = vadd.f32 %v4121_v63, %v4120_v45  ;;  %v4033_v31 = vpop.f32.mrb[121].mxu0  ;;  %v4123_v49 = vpop.f32.mrb[90].mxu1 }
 0x325   : > { %v4034_v2 = vadd.f32 %v4033_v31, %v4032_v19  ;;  %v4035_v37 = vpop.f32.mrb[122].mxu0  ;;  %v4124_v56 = vpop.f32.mrb[91].mxu1 }
 0x326   : > { %v4125_v55 = vadd.f32 %v4124_v56, %v4123_v49  ;;  %v4036_v4 = vpop.f32.mrb[123].mxu0  ;;  %v6177_v46 = vadd.f32 %v6086_v15, %v4122_v47 }
 0x327   : > { %v6180_v21 = vadd.f32 %v4034_v2, %v6081_v30  ;;  %v4037_v35 = vadd.f32 %v4036_v4, %v4035_v37 }
 0x328   : > { %v6183_v44 = vadd.f32 %v6091_v57, %v4125_v55 }
 0x329   : > { %v6186_v22 = vadd.f32 %v4037_v35, %v6083_v53 }
 0x32a   : > { %v4126_v27 = vpop.f32.mrb[92].mxu1 }
 0x32b   : > { %v4038_v17 = vpop.f32.mrb[124].mxu0  ;;  %v4127_v24 = vpop.f32.mrb[93].mxu1 }
 0x32c   : > { %v4128_v52 = vadd.f32 %v4127_v24, %v4126_v27  ;;  %v4039_v23 = vpop.f32.mrb[125].mxu0  ;;  %v4129_v36 = vpop.f32.mrb[94].mxu1 }
 0x32d   : > { %v4040_v34 = vadd.f32 %v4039_v23, %v4038_v17  ;;  %v4041_v58 = vpop.f32.mrb[126].mxu0  ;;  %v4130_v15 = vpop.f32.mrb[95].mxu1 }
 0x32e   : > { %v4131_v51 = vadd.f32 %v4130_v15, %v4129_v36  ;;  %v4042_v5 = vpop.f32.mrb[127].mxu0  ;;  %v6189_v30 = vadd.f32 %v6098_v48, %v4128_v52 }
 0x32f   : > { %v6192_v57 = vadd.f32 %v4040_v34, %v6093_v25  ;;  %v4043_v38 = vadd.f32 %v4042_v5, %v4041_v58 }
 0x330   : > { %v6195_v53 = vadd.f32 %v6102_v16, %v4131_v51 }
 0x331   : > { %v6198_v13 = vadd.f32 %v4043_v38, %v6095_v32 }
 0x332   : > { %v4132_v42 = vpop.f32.mrb[96].mxu1 }
 0x333   : > { %v4133_v10 = vpop.f32.mrb[97].mxu1 }
 0x334   : > { %v4134_v43 = vadd.f32 %v4133_v10, %v4132_v42  ;;  %v4135_v0 = vpop.f32.mrb[98].mxu1 }
 0x335   : > { %v4136_v45 = vpop.f32.mrb[99].mxu1 }
 0x336   : > { %v4137_v19 = vadd.f32 %v4136_v45, %v4135_v0  ;;  %v6201_v63 = vadd.f32 %v6108_v60, %v4134_v43 }
 0x338   : > { %v6204_v48 = vadd.f32 %v6114_v6, %v4137_v19 }
 0x33a   : > { %v4138_v25 = vpop.f32.mrb[100].mxu1 }
 0x33b   : > { %v4139_v47 = vpop.f32.mrb[101].mxu1 }
 0x33c   : > { %v4140_v31 = vadd.f32 %v4139_v47, %v4138_v25  ;;  %v4141_v16 = vpop.f32.mrb[102].mxu1 }
 0x33d   : > { %v4142_v49 = vpop.f32.mrb[103].mxu1 }
 0x33e   : > { %v4143_v2 = vadd.f32 %v4142_v49, %v4141_v16  ;;  %v6207_v32 = vadd.f32 %v6120_v7, %v4140_v31 }
 0x340   : > { %v6210_v37 = vadd.f32 %v6126_v14, %v4143_v2 }
 0x342   : > { %v4144_v56 = vpop.f32.mrb[104].mxu1 }
 0x343   : > { %v4145_v55 = vpop.f32.mrb[105].mxu1 }
 0x344   : > { %v4146_v4 = vadd.f32 %v4145_v55, %v4144_v56  ;;  %v4147_v60 = vpop.f32.mrb[106].mxu1 }
 0x345   : > { %v4148_v35 = vpop.f32.mrb[107].mxu1 }
 0x346   : > { %v4149_v27 = vadd.f32 %v4148_v35, %v4147_v60  ;;  %v6213_v6 = vadd.f32 %v6132_v62, %v4146_v4 }
 0x348   : > { %v6216_v17 = vadd.f32 %v6138_v12, %v4149_v27 }
 0x34a   : > { %v4150_v24 = vpop.f32.mrb[108].mxu1 }
 0x34b   : > { %v4151_v52 = vpop.f32.mrb[109].mxu1 }
 0x34c   : > { %v4152_v23 = vadd.f32 %v4151_v52, %v4150_v24  ;;  %v4153_v7 = vpop.f32.mrb[110].mxu1 }
 0x34d   : > { %v4154_v36 = vpop.f32.mrb[111].mxu1 }
 0x34e   : > { %v4155_v34 = vadd.f32 %v4154_v36, %v4153_v7  ;;  %v6219_v14 = vadd.f32 %v6144_v26, %v4152_v23 }
 0x350   : > { %v6222_v58 = vadd.f32 %v6150_v28, %v4155_v34 }
 0x352   : > { %v4156_v15 = vpop.f32.mrb[112].mxu1 }
 0x353   : > { %v4157_v51 = vpop.f32.mrb[113].mxu1 }
 0x354   : > { %v4158_v5 = vadd.f32 %v4157_v51, %v4156_v15  ;;  %v4159_v62 = vpop.f32.mrb[114].mxu1 }
 0x355   : > { %v4160_v38 = vpop.f32.mrb[115].mxu1 }
 0x356   : > { %v4161_v42 = vadd.f32 %v4160_v38, %v4159_v62  ;;  %v6225_v12 = vadd.f32 %v6156_v1, %v4158_v5 }
 0x358   : > { %v6228_v10 = vadd.f32 %v6162_v8, %v4161_v42 }
 0x35a   : > { %v4162_v43 = vpop.f32.mrb[116].mxu1 }
 0x35b   : > { %v4163_v0 = vpop.f32.mrb[117].mxu1 }
 0x35c   : > { %v4164_v45 = vadd.f32 %v4163_v0, %v4162_v43  ;;  %v4165_v26 = vpop.f32.mrb[118].mxu1 }
 0x35d   : > { %v4166_v19 = vpop.f32.mrb[119].mxu1 }
 0x35e   : > { %v4167_v25 = vadd.f32 %v4166_v19, %v4165_v26  ;;  %v6231_v28 = vadd.f32 %v6168_v61, %v4164_v45 }
 0x360   : > { %v6234_v47 = vadd.f32 %v6174_v3, %v4167_v25 }
 0x362   : > { %v4168_v31 = vpop.f32.mrb[120].mxu1 }
 0x363   : > { %v4169_v16 = vpop.f32.mrb[121].mxu1 }
 0x364   : > { %v4170_v49 = vadd.f32 %v4169_v16, %v4168_v31  ;;  %v4171_v1 = vpop.f32.mrb[122].mxu1 }
 0x365   : > { %v4172_v2 = vpop.f32.mrb[123].mxu1 }
 0x366   : > { %v4173_v56 = vadd.f32 %v4172_v2, %v4171_v1  ;;  %v6237_v8 = vadd.f32 %v6180_v21, %v4170_v49  ;;  %v6251_v21 = vld [vmem:[%s6429_s4] ss:$0 sm:$0xff] }
 0x368   : > { %v6240_v55 = vadd.f32 %v6186_v22, %v4173_v56 }
 0x36a   : > { %v4174_v4 = vpop.f32.mrb[124].mxu1 }
 0x36b   : > { %v4175_v60 = vpop.f32.mrb[125].mxu1 }
 0x36c   : > { %v4176_v35 = vadd.f32 %v4175_v60, %v4174_v4  ;;  %v4177_v61 = vpop.f32.mrb[126].mxu1 }
 0x36d   : > { %v4178_v27 = vpop.f32.mrb[127].mxu1 }
 0x36e   : > { %v4179_v24 = vadd.f32 %v4178_v27, %v4177_v61  ;;  %v6243_v3 = vadd.f32 %v6192_v57, %v4176_v35 }
 0x370   : > { %v6246_v52 = vadd.f32 %v6198_v13, %v4179_v24 }
 0x373   : > { %v4414_v23 = vpop.f32.mrb[32].mxu0 }
 0x374   : > { %v4542_v22 = vadd.f32 %v6117_v50, %v4414_v23  ;;  %v2422_v7 = vpop.f32.mrb[33].mxu0 }
 0x375   : > { %v4545_v36 = vadd.f32 %v6105_v20, %v2422_v7  ;;  %v4415_v34 = vpop.f32.mrb[34].mxu0 }
 0x376   : > { %v2590_v15 = vadd.f32 %v4542_v22, %v6251_v21  ;;  %v4548_v57 = vadd.f32 %v6123_v41, %v4415_v34  ;;  %v2425_v51 = vpop.f32.mrb[35].mxu0 }
 0x377   : > { %v2588_v13 = vadd.f32 %v4545_v36, %v6251_v21  ;;  %v4551_v5 = vadd.f32 %v6111_v33, %v2425_v51 }
 0x378   : > { %v2591_v62 = vadd.f32 %v4548_v57, %v6251_v21  ;;  %v2622_v42 = vmax.f32 %v2590_v15, 0.0 }
 0x379   : > { %v2589_v38 = vadd.f32 %v4551_v5, %v6251_v21  ;;  %v2620_v50 = vmax.f32 %v2588_v13, 0.0 }
 0x37a   : > { %v2623_v43 = vmax.f32 %v2591_v62, 0.0 }
 0x37b   : > { %v2621_v0 = vmax.f32 %v2589_v38, 0.0  ;;  %v4418_v45 = vpop.f32.mrb[36].mxu0 }
 0x37c   : > { %v2653_v20 = vpack.c.bf16 %v2623_v43, %v2622_v42  ;;  %v4554_v26 = vadd.f32 %v6141_v59, %v4418_v45  ;;  %v2438_v19 = vpop.f32.mrb[37].mxu0 }
 0x37d   : > { %v4557_v41 = vadd.f32 %v6129_v54, %v2438_v19  ;;  %v4419_v25 = vpop.f32.mrb[38].mxu0  ;;  %v2652_v31 = vpack.c.bf16 %v2621_v0, %v2620_v50 }
 0x37e   : > { %v2594_v16 = vadd.f32 %v4554_v26, %v6251_v21  ;;  %v4560_v33 = vadd.f32 %v6147_v11, %v4419_v25  ;;  %v2441_v49 = vpop.f32.mrb[39].mxu0 }
 0x37f   : > { %v2592_v1 = vadd.f32 %v4557_v41, %v6251_v21  ;;  %v4563_v2 = vadd.f32 %v6135_v29, %v2441_v49  ;;  %4508 = vmatprep.mubr.bf16.mxu1 %v2652_v31 }
 0x380   : > { %v2595_v56 = vadd.f32 %v4560_v33, %v6251_v21  ;;  %4509 = vmatmul.mubr.bf16.vlgmr.msra.gmra.mrb[128].mxu1 %v2653_v20  ;;  %v2626_v4 = vmax.f32 %v2594_v16, 0.0 }
 0x381   : > { %v2593_v59 = vadd.f32 %v4563_v2, %v6251_v21  ;;  %v2624_v54 = vmax.f32 %v2592_v1, 0.0 }
 0x382   : > { %v2627_v60 = vmax.f32 %v2595_v56, 0.0 }
 0x383   : > { %v2625_v35 = vmax.f32 %v2593_v59, 0.0  ;;  %v4422_v61 = vpop.f32.mrb[40].mxu0 }
 0x384   : > { %v4566_v27 = vadd.f32 %v6165_v39, %v4422_v61  ;;  %v2454_v24 = vpop.f32.mrb[41].mxu0  ;;  %v2655_v11 = vpack.c.bf16 %v2627_v60, %v2626_v4 }
 0x385   : > { %v4569_v23 = vadd.f32 %v6153_v9, %v2454_v24  ;;  %v4423_v22 = vpop.f32.mrb[42].mxu0  ;;  %v2654_v7 = vpack.c.bf16 %v2625_v35, %v2624_v54 }
 0x386   : > { %v2598_v29 = vadd.f32 %v4566_v27, %v6251_v21  ;;  %v4572_v36 = vadd.f32 %v6171_v40, %v4423_v22  ;;  %v2457_v34 = vpop.f32.mrb[43].mxu0 }
 0x387   : > { %v2596_v15 = vadd.f32 %v4569_v23, %v6251_v21  ;;  %v4575_v57 = vadd.f32 %v6159_v18, %v2457_v34  ;;  %4512 = vmatprep.mubr.bf16.mxu1 %v2654_v7 }
 0x388   : > { %v2599_v51 = vadd.f32 %v4572_v36, %v6251_v21  ;;  %4513 = vmatmul.mubr.bf16.gmra.mrb[132].mxu1 %v2655_v11  ;;  %v2630_v13 = vmax.f32 %v2598_v29, 0.0 }
 0x389   : > { %v2597_v39 = vadd.f32 %v4575_v57, %v6251_v21  ;;  %v2628_v9 = vmax.f32 %v2596_v15, 0.0 }
 0x38a   : > { %v2631_v5 = vmax.f32 %v2599_v51, 0.0 }
 0x38b   : > { %v2629_v62 = vmax.f32 %v2597_v39, 0.0  ;;  %v4426_v38 = vpop.f32.mrb[44].mxu0 }
 0x38c   : > { %v4578_v42 = vadd.f32 %v6189_v30, %v4426_v38  ;;  %v2470_v43 = vpop.f32.mrb[45].mxu0  ;;  %v2657_v40 = vpack.c.bf16 %v2631_v5, %v2630_v13 }
 0x38d   : > { %v4581_v50 = vadd.f32 %v6177_v46, %v2470_v43  ;;  %v4427_v0 = vpop.f32.mrb[46].mxu0  ;;  %v2656_v45 = vpack.c.bf16 %v2629_v62, %v2628_v9 }
 0x38e   : > { %v2602_v18 = vadd.f32 %v4578_v42, %v6251_v21  ;;  %v4584_v20 = vadd.f32 %v6195_v53, %v4427_v0  ;;  %v2473_v26 = vpop.f32.mrb[47].mxu0 }
 0x38f   : > { %v2600_v19 = vadd.f32 %v4581_v50, %v6251_v21  ;;  %v4587_v41 = vadd.f32 %v6183_v44, %v2473_v26  ;;  %4516 = vmatprep.mubr.bf16.mxu1 %v2656_v45 }
 0x390   : > { %v2603_v25 = vadd.f32 %v4584_v20, %v6251_v21  ;;  %4517 = vmatmul.mubr.bf16.gmra.mrb[136].mxu1 %v2657_v40  ;;  %v2634_v31 = vmax.f32 %v2602_v18, 0.0 }
 0x391   : > { %v2601_v30 = vadd.f32 %v4587_v41, %v6251_v21  ;;  %v2632_v46 = vmax.f32 %v2600_v19, 0.0 }
 0x392   : > { %v2635_v16 = vmax.f32 %v2603_v25, 0.0 }
 0x393   : > { %v2633_v33 = vmax.f32 %v2601_v30, 0.0  ;;  %v4430_v49 = vpop.f32.mrb[48].mxu0 }
 0x394   : > { %v4590_v1 = vadd.f32 %v6207_v32, %v4430_v49  ;;  %v2486_v2 = vpop.f32.mrb[49].mxu0  ;;  %v2659_v53 = vpack.c.bf16 %v2635_v16, %v2634_v31 }
 0x395   : > { %v4593_v56 = vadd.f32 %v6201_v63, %v2486_v2  ;;  %v4431_v59 = vpop.f32.mrb[50].mxu0  ;;  %v2658_v4 = vpack.c.bf16 %v2633_v33, %v2632_v46 }
 0x396   : > { %v2606_v44 = vadd.f32 %v4590_v1, %v6251_v21  ;;  %v4596_v60 = vadd.f32 %v6210_v37, %v4431_v59  ;;  %v2489_v54 = vpop.f32.mrb[51].mxu0 }
 0x397   : > { %v2604_v35 = vadd.f32 %v4593_v56, %v6251_v21  ;;  %v4599_v61 = vadd.f32 %v6204_v48, %v2489_v54  ;;  %4520 = vmatprep.mubr.bf16.mxu1 %v2658_v4 }
 0x398   : > { %v2607_v27 = vadd.f32 %v4596_v60, %v6251_v21  ;;  %4521 = vmatmul.mubr.bf16.gmra.mrb[140].mxu1 %v2659_v53  ;;  %v2638_v24 = vmax.f32 %v2606_v44, 0.0 }
 0x399   : > { %v2605_v32 = vadd.f32 %v4599_v61, %v6251_v21  ;;  %v2636_v63 = vmax.f32 %v2604_v35, 0.0 }
 0x39a   : > { %v2639_v11 = vmax.f32 %v2607_v27, 0.0 }
 0x39b   : > { %v2637_v23 = vmax.f32 %v2605_v32, 0.0  ;;  %v4434_v22 = vpop.f32.mrb[52].mxu0 }
 0x39c   : > { %v4602_v7 = vadd.f32 %v6219_v14, %v4434_v22  ;;  %v2502_v29 = vpop.f32.mrb[53].mxu0  ;;  %v2661_v37 = vpack.c.bf16 %v2639_v11, %v2638_v24 }
 0x39d   : > { %v4605_v36 = vadd.f32 %v6213_v6, %v2502_v29  ;;  %v4435_v34 = vpop.f32.mrb[54].mxu0  ;;  %v2660_v15 = vpack.c.bf16 %v2637_v23, %v2636_v63 }
 0x39e   : > { %v2610_v48 = vadd.f32 %v4602_v7, %v6251_v21  ;;  %v4608_v57 = vadd.f32 %v6222_v58, %v4435_v34  ;;  %v2505_v51 = vpop.f32.mrb[55].mxu0 }
 0x39f   : > { %v2608_v39 = vadd.f32 %v4605_v36, %v6251_v21  ;;  %v4611_v13 = vadd.f32 %v6216_v17, %v2505_v51  ;;  %4524 = vmatprep.mubr.bf16.mxu1 %v2660_v15 }
 0x3a0   : > { %v2611_v5 = vadd.f32 %v4608_v57, %v6251_v21  ;;  %4525 = vmatmul.mubr.bf16.gmra.mrb[144].mxu1 %v2661_v37  ;;  %v2642_v9 = vmax.f32 %v2610_v48, 0.0 }
 0x3a1   : > { %v2609_v14 = vadd.f32 %v4611_v13, %v6251_v21  ;;  %v2640_v6 = vmax.f32 %v2608_v39, 0.0 }
 0x3a2   : > { %v2643_v62 = vmax.f32 %v2611_v5, 0.0 }
 0x3a3   : > { %v2641_v38 = vmax.f32 %v2609_v14, 0.0  ;;  %v4438_v42 = vpop.f32.mrb[56].mxu0 }
 0x3a4   : > { %v4614_v43 = vadd.f32 %v6231_v28, %v4438_v42  ;;  %v2518_v40 = vpop.f32.mrb[57].mxu0  ;;  %v2663_v58 = vpack.c.bf16 %v2643_v62, %v2642_v9 }
 0x3a5   : > { %v4617_v50 = vadd.f32 %v6225_v12, %v2518_v40  ;;  %v4439_v0 = vpop.f32.mrb[58].mxu0  ;;  %v2662_v45 = vpack.c.bf16 %v2641_v38, %v2640_v6 }
 0x3a6   : > { %v2614_v17 = vadd.f32 %v4614_v43, %v6251_v21  ;;  %v4620_v18 = vadd.f32 %v6234_v47, %v4439_v0  ;;  %v2521_v20 = vpop.f32.mrb[59].mxu0 }
 0x3a7   : > { %v2612_v26 = vadd.f32 %v4617_v50, %v6251_v21  ;;  %v4623_v19 = vadd.f32 %v6228_v10, %v2521_v20  ;;  %4528 = vmatprep.mubr.bf16.mxu1 %v2662_v45 }
 0x3a8   : > { %v2615_v41 = vadd.f32 %v4620_v18, %v6251_v21  ;;  %4529 = vmatmul.mubr.bf16.gmra.mrb[148].mxu1 %v2663_v58  ;;  %v2646_v25 = vmax.f32 %v2614_v17, 0.0 }
 0x3a9   : > { %v2613_v28 = vadd.f32 %v4623_v19, %v6251_v21  ;;  %v2644_v12 = vmax.f32 %v2612_v26, 0.0 }
 0x3aa   : > { %v2647_v30 = vmax.f32 %v2615_v41, 0.0 }
 0x3ab   : > { %v2645_v31 = vmax.f32 %v2613_v28, 0.0  ;;  %v4442_v16 = vpop.f32.mrb[60].mxu0 }
 0x3ac   : > { %v4626_v46 = vadd.f32 %v6243_v3, %v4442_v16  ;;  %v2534_v33 = vpop.f32.mrb[61].mxu0  ;;  %v2665_v47 = vpack.c.bf16 %v2647_v30, %v2646_v25 }
 0x3ad   : > { %v4629_v49 = vadd.f32 %v6237_v8, %v2534_v33  ;;  %v4443_v1 = vpop.f32.mrb[62].mxu0  ;;  %v2664_v2 = vpack.c.bf16 %v2645_v31, %v2644_v12 }
 0x3ae   : > { %v2618_v10 = vadd.f32 %v4626_v46, %v6251_v21  ;;  %v4632_v53 = vadd.f32 %v6246_v52, %v4443_v1  ;;  %v2537_v56 = vpop.f32.mrb[63].mxu0  ;;  %v6320_v52 = vld [vmem:[%s6432_s7] ss:$0 sm:$0xff] }
 0x3af   : > { %v2616_v59 = vadd.f32 %v4629_v49, %v6251_v21  ;;  %v4635_v4 = vadd.f32 %v6240_v55, %v2537_v56  ;;  %4532 = vmatprep.mubr.bf16.mxu1 %v2664_v2 }
 0x3b0   : > { %v2619_v44 = vadd.f32 %v4632_v53, %v6251_v21  ;;  %4533 = vmatmul.mubr.bf16.gmra.mrb[152].mxu1 %v2665_v47  ;;  %v2650_v60 = vmax.f32 %v2618_v10, 0.0 }
 0x3b1   : > { %v2617_v3 = vadd.f32 %v4635_v4, %v6251_v21  ;;  %v2648_v8 = vmax.f32 %v2616_v59, 0.0 }
 0x3b2   : > { %v2651_v54 = vmax.f32 %v2619_v44, 0.0 }
 0x3b3   : > { %v2649_v35 = vmax.f32 %v2617_v3, 0.0 }
 0x3b4   : > { %v2667_v61 = vpack.c.bf16 %v2651_v54, %v2650_v60 }
 0x3b5   : > { %v2666_v27 = vpack.c.bf16 %v2649_v35, %v2648_v8 }
 0x3b7   : > { %4536 = vmatprep.mubr.bf16.mxu1 %v2666_v27 }
 0x3b8   : > { %4537 = vmatmul.mubr.bf16.gmra.mrb[156].mxu1 %v2667_v61 }
 0x453   : > { %v4510_v55 = vpop.f32.mrb[128].mxu1 }
 0x454   : > { %v3127_v32 = vadd.f32 %v4510_v55, %v6320_v52  ;;  %v2991_v24 = vpop.f32.mrb[129].mxu1 }
 0x455   : > { %v3125_v21 = vadd.f32 %v6320_v52, %v2991_v24  ;;  %v4511_v11 = vpop.f32.mrb[130].mxu1 }
 0x456   : > { %v3128_v63 = vadd.f32 %v4511_v11, %v6320_v52  ;;  %v2994_v23 = vpop.f32.mrb[131].mxu1  ;;  %v3159_v7 = vmax.f32 %v3127_v32, 0.0 }
 0x457   : > { %v3126_v22 = vadd.f32 %v6320_v52, %v2994_v23  ;;  %v3157_v37 = vmax.f32 %v3125_v21, 0.0 }
 0x458   : > { %v3160_v29 = vmax.f32 %v3128_v63, 0.0 }
 0x459   : > { %v3158_v36 = vmax.f32 %v3126_v22, 0.0 }
 0x45a   : > { %v3685_v34 = vpack.c.bf16 %v3160_v29, %v3159_v7 }
 0x45b   : > { %v3680_v15 = vpack.c.bf16 %v3158_v36, %v3157_v37  ;;  %v4514_v48 = vpop.f32.mrb[132].mxu1 }
 0x45c   : > { %3757 = vst [vmem:[%s6328_s16 + $0x8] sm:$0xff] %v3685_v34   ;;  %v3131_v57 = vadd.f32 %v4514_v48, %v6320_v52  ;;  %v3007_v51 = vpop.f32.mrb[133].mxu1 }
 0x45d   : > { %3681 = vst [vmem:[%s6328_s16] sm:$0xff] %v3680_v15   ;;  %v3129_v39 = vadd.f32 %v6320_v52, %v3007_v51  ;;  %v4515_v13 = vpop.f32.mrb[134].mxu1 }
 0x45e   : > { %v3132_v5 = vadd.f32 %v4515_v13, %v6320_v52  ;;  %v3010_v14 = vpop.f32.mrb[135].mxu1  ;;  %v3163_v62 = vmax.f32 %v3131_v57, 0.0 }
 0x45f   : > { %v3130_v9 = vadd.f32 %v6320_v52, %v3010_v14  ;;  %v3161_v38 = vmax.f32 %v3129_v39, 0.0 }
 0x460   : > { %v3164_v6 = vmax.f32 %v3132_v5, 0.0 }
 0x461   : > { %v3162_v42 = vmax.f32 %v3130_v9, 0.0 }
 0x462   : > { %v3695_v43 = vpack.c.bf16 %v3164_v6, %v3163_v62 }
 0x463   : > { %v3690_v40 = vpack.c.bf16 %v3162_v42, %v3161_v38  ;;  %v4518_v58 = vpop.f32.mrb[136].mxu1 }
 0x464   : > { %3759 = vst [vmem:[%s6328_s16 + $0x18] sm:$0xff] %v3695_v43   ;;  %v3135_v50 = vadd.f32 %v4518_v58, %v6320_v52  ;;  %v3023_v0 = vpop.f32.mrb[137].mxu1 }
 0x465   : > { %3758 = vst [vmem:[%s6328_s16 + $0x10] sm:$0xff] %v3690_v40   ;;  %v3133_v45 = vadd.f32 %v6320_v52, %v3023_v0  ;;  %v4519_v17 = vpop.f32.mrb[138].mxu1 }
 0x466   : > { %v3136_v18 = vadd.f32 %v4519_v17, %v6320_v52  ;;  %v3026_v20 = vpop.f32.mrb[139].mxu1  ;;  %v3167_v19 = vmax.f32 %v3135_v50, 0.0 }
 0x467   : > { %v3134_v26 = vadd.f32 %v6320_v52, %v3026_v20  ;;  %v3165_v28 = vmax.f32 %v3133_v45, 0.0 }
 0x468   : > { %v3168_v41 = vmax.f32 %v3136_v18, 0.0 }
 0x469   : > { %v3166_v25 = vmax.f32 %v3134_v26, 0.0 }
 0x46a   : > { %v3705_v30 = vpack.c.bf16 %v3168_v41, %v3167_v19 }
 0x46b   : > { %v3700_v12 = vpack.c.bf16 %v3166_v25, %v3165_v28  ;;  %v4522_v31 = vpop.f32.mrb[140].mxu1 }
 0x46c   : > { %3761 = vst [vmem:[%s6328_s16 + $0x28] sm:$0xff] %v3705_v30   ;;  %v3139_v16 = vadd.f32 %v4522_v31, %v6320_v52  ;;  %v3039_v46 = vpop.f32.mrb[141].mxu1 }
 0x46d   : > { %3760 = vst [vmem:[%s6328_s16 + $0x20] sm:$0xff] %v3700_v12   ;;  %v3137_v33 = vadd.f32 %v6320_v52, %v3039_v46  ;;  %v4523_v47 = vpop.f32.mrb[142].mxu1 }
 0x46e   : > { %v3140_v49 = vadd.f32 %v4523_v47, %v6320_v52  ;;  %v3042_v1 = vpop.f32.mrb[143].mxu1  ;;  %v3171_v10 = vmax.f32 %v3139_v16, 0.0 }
 0x46f   : > { %v3138_v2 = vadd.f32 %v6320_v52, %v3042_v1  ;;  %v3169_v56 = vmax.f32 %v3137_v33, 0.0 }
 0x470   : > { %v3172_v53 = vmax.f32 %v3140_v49, 0.0 }
 0x471   : > { %v3170_v59 = vmax.f32 %v3138_v2, 0.0 }
 0x472   : > { %v3715_v4 = vpack.c.bf16 %v3172_v53, %v3171_v10 }
 0x473   : > { %v3710_v44 = vpack.c.bf16 %v3170_v59, %v3169_v56  ;;  %v4526_v3 = vpop.f32.mrb[144].mxu1 }
 0x474   : > { %3763 = vst [vmem:[%s6328_s16 + $0x38] sm:$0xff] %v3715_v4   ;;  %v3143_v60 = vadd.f32 %v4526_v3, %v6320_v52  ;;  %v3055_v54 = vpop.f32.mrb[145].mxu1 }
 0x475   : > { %3762 = vst [vmem:[%s6328_s16 + $0x30] sm:$0xff] %v3710_v44   ;;  %v3141_v8 = vadd.f32 %v6320_v52, %v3055_v54  ;;  %v4527_v35 = vpop.f32.mrb[146].mxu1 }
 0x476   : > { %v3144_v61 = vadd.f32 %v4527_v35, %v6320_v52  ;;  %v3058_v27 = vpop.f32.mrb[147].mxu1  ;;  %v3175_v32 = vmax.f32 %v3143_v60, 0.0 }
 0x477   : > { %v3142_v55 = vadd.f32 %v6320_v52, %v3058_v27  ;;  %v3173_v21 = vmax.f32 %v3141_v8, 0.0 }
 0x478   : > { %v3176_v24 = vmax.f32 %v3144_v61, 0.0 }
 0x479   : > { %v3174_v11 = vmax.f32 %v3142_v55, 0.0 }
 0x47a   : > { %v3725_v63 = vpack.c.bf16 %v3176_v24, %v3175_v32 }
 0x47b   : > { %v3720_v23 = vpack.c.bf16 %v3174_v11, %v3173_v21  ;;  %v4530_v22 = vpop.f32.mrb[148].mxu1 }
 0x47c   : > { %3765 = vst [vmem:[%s6328_s16 + $0x48] sm:$0xff] %v3725_v63   ;;  %v3147_v7 = vadd.f32 %v4530_v22, %v6320_v52  ;;  %v3071_v29 = vpop.f32.mrb[149].mxu1 }
 0x47d   : > { %3764 = vst [vmem:[%s6328_s16 + $0x40] sm:$0xff] %v3720_v23   ;;  %v3145_v37 = vadd.f32 %v6320_v52, %v3071_v29  ;;  %v4531_v36 = vpop.f32.mrb[150].mxu1 }
 0x47e   : > { %v3148_v34 = vadd.f32 %v4531_v36, %v6320_v52  ;;  %v3074_v15 = vpop.f32.mrb[151].mxu1  ;;  %v3179_v57 = vmax.f32 %v3147_v7, 0.0 }
 0x47f   : > { %v3146_v48 = vadd.f32 %v6320_v52, %v3074_v15  ;;  %v3177_v39 = vmax.f32 %v3145_v37, 0.0 }
 0x480   : > { %v3180_v51 = vmax.f32 %v3148_v34, 0.0 }
 0x481   : > { %v3178_v13 = vmax.f32 %v3146_v48, 0.0 }
 0x482   : > { %v3735_v5 = vpack.c.bf16 %v3180_v51, %v3179_v57 }
 0x483   : > { %v3730_v14 = vpack.c.bf16 %v3178_v13, %v3177_v39  ;;  %v4534_v9 = vpop.f32.mrb[152].mxu1 }
 0x484   : > { %3767 = vst [vmem:[%s6328_s16 + $0x58] sm:$0xff] %v3735_v5   ;;  %v3151_v62 = vadd.f32 %v4534_v9, %v6320_v52  ;;  %v3087_v6 = vpop.f32.mrb[153].mxu1 }
 0x485   : > { %3766 = vst [vmem:[%s6328_s16 + $0x50] sm:$0xff] %v3730_v14   ;;  %v3149_v38 = vadd.f32 %v6320_v52, %v3087_v6  ;;  %v4535_v42 = vpop.f32.mrb[154].mxu1 }
 0x486   : > { %v3152_v43 = vadd.f32 %v4535_v42, %v6320_v52  ;;  %v3090_v40 = vpop.f32.mrb[155].mxu1  ;;  %v3183_v50 = vmax.f32 %v3151_v62, 0.0 }
 0x487   : > { %v3150_v58 = vadd.f32 %v6320_v52, %v3090_v40  ;;  %v3181_v45 = vmax.f32 %v3149_v38, 0.0 }
 0x488   : > { %v3184_v0 = vmax.f32 %v3152_v43, 0.0 }
 0x489   : > { %v3182_v17 = vmax.f32 %v3150_v58, 0.0 }
 0x48a   : > { %v3745_v18 = vpack.c.bf16 %v3184_v0, %v3183_v50 }
 0x48b   : > { %v3740_v20 = vpack.c.bf16 %v3182_v17, %v3181_v45  ;;  %v4538_v26 = vpop.f32.mrb[156].mxu1 }
 0x48c   : > { %3769 = vst [vmem:[%s6328_s16 + $0x68] sm:$0xff] %v3745_v18   ;;  %v3155_v19 = vadd.f32 %v4538_v26, %v6320_v52  ;;  %v3103_v41 = vpop.f32.mrb[157].mxu1 }
 0x48d   : > { %3768 = vst [vmem:[%s6328_s16 + $0x60] sm:$0xff] %v3740_v20   ;;  %v3153_v28 = vadd.f32 %v6320_v52, %v3103_v41  ;;  %v4539_v25 = vpop.f32.mrb[158].mxu1 }
 0x48e   : > { %v3156_v30 = vadd.f32 %v4539_v25, %v6320_v52  ;;  %v3106_v12 = vpop.f32.mrb[159].mxu1  ;;  %v3187_v16 = vmax.f32 %v3155_v19, 0.0 }
 0x48f   : > { %v3154_v31 = vadd.f32 %v6320_v52, %v3106_v12  ;;  %v3185_v33 = vmax.f32 %v3153_v28, 0.0 }
 0x490   : > { %v3188_v46 = vmax.f32 %v3156_v30, 0.0 }
 0x491   : > { %v3186_v47 = vmax.f32 %v3154_v31, 0.0 }
 0x492   : > { %v3755_v49 = vpack.c.bf16 %v3188_v46, %v3187_v16 }
 0x493   : > { %v3750_v1 = vpack.c.bf16 %v3186_v47, %v3185_v33 }
 0x494   : > { %3771 = vst [vmem:[%s6328_s16 + $0x78] sm:$0xff] %v3755_v49  }
 0x495   : > { %3770 = vst [vmem:[%s6328_s16 + $0x70] sm:$0xff] %v3750_v1  }
 0x496   : > { %5107 = shalt.err (!%p5104_p13)
}
 0x497   : > { %s5108_s19 = scalar_lea.hbm %s6377_s14, 2048  ;;  %s5112_s18 = scalar_lea.hbm %s6433_s8, 4096 }
 0x498   : > { %p5109_p9 = scmp.ne.s32.totalorder %s6377_s14, %s5108_s19  ;;  %p5113_p4 = scmp.lt.u32.totalorder %s6377_s14, %s6433_s8 }
 0x499   : > { %p5114_p8 = scmp.lt.u32.totalorder %s5112_s18, %s5108_s19  ;;  %p5116_p3 = scmp.lt.u32.totalorder %s5108_s19, %s6377_s14 }
 0x49a   : > { %p5110_p0 = pnand %p5109_p9, %p5397_p10 }
 0x49b   : > { %p5115_p6 = por %p5114_p8, %p5113_p4 }
 0x49c   : > { %p5111_p11 = pneg %p5110_p0 }
 0x49d   : > { %p5117_p5 = por %p5116_p3, %p5115_p6 }
 0x49f   : > { %p5118_p7 = pnand %p5117_p5, %p5111_p11 }
 0x4a1   : > { %5121 = shalt.err (!%p5118_p7)
}
 0x4a2   : > { %s5179_s22 = smov 64   ;;  %s5180_s17 = smov 4  }
 0x4a3   : > { %4750 = dma.vmem_to_hbm [thread:$0]  (%p5397_p10), %s6379_s10, 2048, %s6377_s14, %s3350_s9, %s5179_s22, %s5179_s22, %s5180_s17  }
 0x4a4 PF: > { %s6465_s20 = sld [smem:[#allocation16_spill]]  ;;  %s6466_s27 = sld [smem:[#allocation17_spill]] }
 0x4a5   : > { %p6468_p1 = scmp.ge.s32.totalorder %s5168_s30, 2 }
 0x4aa   : > { %s3378_s11 = sand.u32 1, %s6465_s20   ;;  %p6467_p12 = scmp.ne.s32.totalorder %s6466_s27, 0 }
 0x4ab   : > { %s3379_s13 = scalar_lea.sflag [#allocation4], %s3378_s11 }
 0x4ac   : > { %p4770_p2 = pnand %p6468_p1, %p6467_p12 }
 0x4ae   : > { %5151 = dma.done.wait (!%p4770_p2), %s3379_s13, 2048  }
 0x4af   : > { %5153 = vsyncadd (!%p4770_p2), %s3379_s13, 4294965248  ;;  %p23_p13 = scmp.ge.s32.totalorder %s5387_s26, 4   ;;  %s6469_s27 = smov %s5160_s28 }
 0x4b0   : > { %s6470_s28 = smov %s5164_s29  ;;  %s6471_s29 = smov %s5403_s24 }
 0x4b1   : > { %s6472_s30 = smov %s5387_s26  ;;  %25 = sbr.rel (!%p23_p13) target bundleno = 7 (0x7), region = 115 }
 0x4b8   :  { %3384 = vsyncpa [#allocation3], 1 }
 0x4b9   :  { %3386 = vsyncpa [#allocation3 + $0x1], 1 }
 0x4ba   :  { %3387 = vsyncpa [#allocation6], 1 }
 0x4bb   :  { %3388 = vsyncpa [#allocation9], 1 }
 0x4bc   :  { %3389 = vsyncpa [#allocation4], 1 }
 0x4bd   :  { %3391 = vsyncpa [#allocation4 + $0x1], 1 }

</bundles_post_ra>
